<compile_context>
chip_gen: v7x
topology: tpu7x:2x2x1
jax: 0.10.0
libtpu: 0.0.40
codegen_flags: <defaults>
</compile_context>

<pallas_src>
import functools

import numpy as np
import jax
import jax.numpy as jnp
from jax import lax
from jax.experimental import pallas as pl
from jax.experimental.pallas import tpu as pltpu


def _mi_hist_kernel(vbc_ref, yt_ref, yp_ref, pab_ref, *,
                    preterm, maxval, sub_n, num_sub, unroll, compute_dtype):
    ni = pl.program_id(2)
    use_bf16 = jnp.dtype(compute_dtype) == jnp.dtype(jnp.bfloat16)

    # Output block is resident across the (arbitrary) voxel-tile axis; it is
    # the cross-tile accumulator (no extra scratch / final copy needed).
    @pl.when(ni == 0)
    def _():
        pab_ref[...] = jnp.zeros_like(pab_ref)

    vbc = vbc_ref[...]                       # (num_bins, 1) bin centers, hoisted
    neg_pre = jnp.float32(-preterm)

    def body(s, acc):
        start = pl.multiple_of(s * sub_n, sub_n)
        yt = jnp.clip(yt_ref[0, 0, :, pl.ds(start, sub_n)], 0.0, maxval)
        yp = jnp.clip(yp_ref[0, 0, :, pl.ds(start, sub_n)], 0.0, maxval)

        # Gaussian soft-binning weights, (num_bins, sub_n).  The exp argument
        # is always built in f32 (numerically sensitive cancellation); only
        # the exp itself + downstream MXU operands drop to bf16 on v6e/v7x.
        arg_a = jnp.square(yt - vbc) * neg_pre
        arg_b = jnp.square(yp - vbc) * neg_pre
        if use_bf16:
            ia = jnp.exp(arg_a.astype(jnp.bfloat16))
            ib = jnp.exp(arg_b.astype(jnp.bfloat16))
        else:
            ia = jnp.exp(arg_a)
            ib = jnp.exp(arg_b)

        # One reciprocal per voxel (EUP approx seed + one Newton step for f32
        # accuracy) instead of a divide per (bin, voxel) element.
        sa = jnp.sum(ia.astype(jnp.float32), axis=0, keepdims=True)  # (1, sub_n)
        sb = jnp.sum(ib.astype(jnp.float32), axis=0, keepdims=True)
        ra = pl.reciprocal(sa, approx=True)
        rb = pl.reciprocal(sb, approx=True)
        ra = ra * (2.0 - sa * ra)
        rb = rb * (2.0 - sb * rb)

        ia_s = ia * ra.astype(compute_dtype)
        ib_s = ib * rb.astype(compute_dtype)

        # pab[k, l] += sum_n ia_s[k, n] * ib_s[l, n]: A @ B^T contracted over
        # the lane axis of both operands (same orientation as q @ k.T), f32
        # accumulation on the MXU.  Marginals pa / pb are recovered in the
        # epilogue as row/col sums of pab, so no XLU reductions are needed.
        return acc + lax.dot_general(
            ia_s, ib_s, (((1,), (1,)), ((), ())),
            preferred_element_type=jnp.float32)

    acc0 = jnp.zeros(pab_ref.shape[2:], jnp.float32)
    acc = lax.fori_loop(0, num_sub, body, acc0, unroll=unroll)
    # Single read-modify-write of the resident output block per voxel tile.
    pab_ref[0, 0] += acc


def _default_softbin_dtype():
    """bf16 soft-binning on chips with bf16 EUP/VPU/MXU paths, else f32."""
    try:
        kind = jax.devices()[0].device_kind.lower()
    except Exception:
        return jnp.float32
    for tag in ("v6", "v7", "7x", "tpu7"):
        if tag in kind:
            return jnp.bfloat16
    return jnp.float32


def _default_tile_n(sub_n):
    """Voxel tile sized from the chip's VMEM (amortizes ~0.35us/grid-step)."""
    vmem_bytes = 64 * 1024 * 1024            # v7x per-TC lower bound
    try:
        info = pltpu.get_tpu_info()
        vmem_bytes = int(getattr(info, "vmem_capacity_bytes", vmem_bytes)
                         or vmem_bytes)
    except Exception:
        pass
    # 2 voxel inputs x double-buffer x f32 x 8 (sublane padding of the
    # (1, tile_n) window); stay well under 1/8 of VMEM.
    cap = (vmem_bytes // 8) // (2 * 2 * 4 * 8)
    cap = max(sub_n, (cap // sub_n) * sub_n)
    return min(16 * 1024, cap)


class MutualInformationPallas:
    """Pallas port of the PyTorch MutualInformation module (forward pass)."""

    def __init__(self, sigma_ratio=1, minval=0.0, maxval=1.0, num_bin=32,
                 softbin_dtype=None):
        bin_centers = np.linspace(minval, maxval, num=num_bin)
        sigma = float(np.mean(np.diff(bin_centers))) * sigma_ratio
        self.preterm = 1.0 / (2.0 * sigma ** 2)
        self.minval = float(minval)
        self.max_clip = float(maxval)
        self.num_bins = int(num_bin)
        self.softbin_dtype = (softbin_dtype if softbin_dtype is not None
                              else _default_softbin_dtype())

    def mi(self, y_true, y_pred, *, tile_n=None, sub_n=256, n_splits=None):
        assert y_true.shape == y_pred.shape
        assert sub_n % 128 == 0
        b = y_true.shape[0]
        n = int(np.prod(y_true.shape[1:]))

        if n_splits is None:
            n_splits = 1        # see TODO(synk) above re: v7x CORE_PARALLEL
        if tile_n is None:
            tile_n = _default_tile_n(sub_n)

        def _round_up(x, m):
            return ((x + m - 1) // m) * m

        tile_n = max(sub_n, _round_up(tile_n, sub_n))
        n_per_split_raw = -(-n // n_splits)
        tile_n = min(tile_n, _round_up(n_per_split_raw, sub_n))
        n_tiles = -(-n_per_split_raw // tile_n)
        n_per_split = n_tiles * tile_n
        n_pad_total = n_splits * n_per_split
        n_extra = n_pad_total - n

        num_sub = tile_n // sub_n
        unroll = 1
        for f in (8, 4, 2):
            if num_sub % f == 0:
                unroll = f
                break

        yt = y_true.reshape(b, n).astype(jnp.float32)
        yp = y_pred.reshape(b, n).astype(jnp.float32)
        if n_extra:
            # Zero-pad; the padded voxels' (constant) histogram contribution
            # is subtracted exactly in the epilogue -> no masking in the loop.
            yt = jnp.pad(yt, ((0, 0), (0, n_extra)))
            yp = jnp.pad(yp, ((0, 0), (0, n_extra)))
        yt = yt.reshape(b, n_splits, 1, n_per_split)
        yp = yp.reshape(b, n_splits, 1, n_per_split)

        nb = self.num_bins
        vbc = jnp.linspace(self.minval, self.max_clip, nb,
                           dtype=jnp.float32).reshape(nb, 1)

        kernel = functools.partial(
            _mi_hist_kernel,
            preterm=self.preterm,
            maxval=self.max_clip,
            sub_n=sub_n,
            num_sub=num_sub,
            unroll=unroll,
            compute_dtype=self.softbin_dtype,
        )

        pab_raw = pl.pallas_call(
            kernel,
            out_shape=jax.ShapeDtypeStruct((b, n_splits, nb, nb), jnp.float32),
            grid_spec=pltpu.PrefetchScalarGridSpec(
                num_scalar_prefetch=0,
                grid=(b, n_splits, n_tiles),
                in_specs=[
                    pl.BlockSpec((nb, 1), lambda bi, si, ni: (0, 0)),
                    pl.BlockSpec((1, 1, 1, tile_n),
                                 lambda bi, si, ni: (bi, si, 0, ni)),
                    pl.BlockSpec((1, 1, 1, tile_n),
                                 lambda bi, si, ni: (bi, si, 0, ni)),
                ],
                out_specs=pl.BlockSpec((1, 1, nb, nb),
                                       lambda bi, si, ni: (bi, si, 0, 0)),
            ),
            compiler_params=pltpu.CompilerParams(
                dimension_semantics=("parallel", "parallel", "arbitrary")),
        )(vbc, yt, yp)

        # Tiny epilogue (32x32 per batch) in plain XLA: combine splits, remove
        # the padded-voxel contribution, normalize, recover the marginals from
        # the joint, and evaluate the MI formula.
        s_ab = jnp.sum(pab_raw, axis=1)                        # (b, nb, nb)
        if n_extra:
            w0 = jnp.exp(-self.preterm * jnp.square(0.0 - vbc[:, 0]))
            w0 = w0 / jnp.sum(w0)
            s_ab = s_ab - n_extra * (w0[:, None] * w0[None, :])[None]
        pab = jnp.maximum(s_ab, 0.0) / float(n)
        pa = jnp.sum(pab, axis=2)                              # (b, nb)
        pb = jnp.sum(pab, axis=1)                              # (b, nb)
        papb = pa[:, :, None] * pb[:, None, :] + 1e-6
        mi_b = jnp.sum(pab * jnp.log(pab / papb + 1e-6), axis=(1, 2))
        return jnp.mean(mi_b)

    def forward(self, y_true, y_pred, weight=None):
        # `weight` is unused in the reference module as well.
        return -self.mi(y_true, y_pred)

    __call__ = forward


def _reference_mi(y_true, y_pred, preterm, max_clip, num_bins, minval=0.0):
    """Pure-JAX f32 transcription of the torch forward for a sanity check."""
    yp = jnp.clip(y_pred, 0.0, max_clip).reshape(y_pred.shape[0], -1)[..., None]
    yt = jnp.clip(y_true, 0.0, max_clip).reshape(y_true.shape[0], -1)[..., None]
    nb_voxels = yp.shape[1]
    vbc = jnp.linspace(minval, max_clip, num_bins).reshape(1, 1, num_bins)
    ia = jnp.exp(-preterm * jnp.square(yt - vbc))
    ia = ia / jnp.sum(ia, axis=-1, keepdims=True)
    ib = jnp.exp(-preterm * jnp.square(yp - vbc))
    ib = ib / jnp.sum(ib, axis=-1, keepdims=True)
    pab = jnp.einsum('bnk,bnl->bkl', ia, ib) / nb_voxels
    pa = jnp.mean(ia, axis=1, keepdims=True)
    pb = jnp.mean(ib, axis=1, keepdims=True)
    papb = jnp.einsum('bok,bol->bkl', pa, pb) + 1e-6
    mi = jnp.sum(pab * jnp.log(pab / papb + 1e-6), axis=(1, 2))
    return -jnp.mean(mi)


if __name__ == "__main__":
    key = jax.random.PRNGKey(0)
    k1, k2, k3, k4 = jax.random.split(key, 4)

    # Explicit f32 soft-binning: tight comparison against the f32 reference.
    mod_f32 = MutualInformationPallas(sigma_ratio=1, minval=0.0, maxval=1.0,
                                      num_bin=32, softbin_dtype=jnp.float32)

    # Case 1: NCHW inputs, batch=2, channels=4, spatial 16x16 -> 1024 voxels.
    y_true = jax.random.uniform(k1, (2, 4, 16, 16), dtype=jnp.float32)
    y_pred = jax.random.uniform(k2, (2, 4, 16, 16), dtype=jnp.float32)
    loss = jax.block_until_ready(mod_f32(y_true, y_pred, weight=None))
    ref = _reference_mi(y_true, y_pred, mod_f32.preterm, mod_f32.max_clip,
                        mod_f32.num_bins, mod_f32.minval)
    assert jnp.allclose(loss, ref, rtol=1e-3, atol=1e-5), (loss, ref)

    # Case 2: batch=1 with a ragged voxel count (3*5*7 = 105) -> exercises the
    # zero-pad + exact epilogue correction path (no masking in the hot loop).
    y_true2 = jax.random.uniform(k3, (1, 3, 5, 7), dtype=jnp.float32)
    y_pred2 = jax.random.uniform(k4, (1, 3, 5, 7), dtype=jnp.float32)
    loss2 = jax.block_until_ready(mod_f32(y_true2, y_pred2, weight=None))
    ref2 = _reference_mi(y_true2, y_pred2, mod_f32.preterm, mod_f32.max_clip,
                         mod_f32.num_bins, mod_f32.minval)
    assert jnp.allclose(loss2, ref2, rtol=1e-3, atol=1e-5), (loss2, ref2)

    # Case 3: hardware-default mode (bf16 exp / MXU operands on v6e & v7x,
    # pure f32 on v5e).  bf16 soft-binning legitimately changes numerics, so
    # compare with a looser tolerance.
    mod_auto = MutualInformationPallas(sigma_ratio=1, minval=0.0, maxval=1.0,
                                       num_bin=32)
    loss_auto = jax.block_until_ready(mod_auto(y_true, y_pred, weight=None))
    assert bool(jnp.isfinite(loss_auto)), loss_auto
    assert jnp.allclose(loss_auto, ref, rtol=5e-2, atol=2e-2), (loss_auto, ref)

    print("KERNEL_OK")
</pallas_src>

<mosaic_0001>
module attributes {stable_mosaic.version = 11 : i64} {
  func.func @_mi_hist_kernel(%arg0: i32, %arg1: i32, %arg2: i32, %arg3: memref<32x1xf32, #tpu.memory_space<vmem>>, %arg4: memref<1x1x1x1024xf32, #tpu.memory_space<vmem>>, %arg5: memref<1x1x1x1024xf32, #tpu.memory_space<vmem>>, %arg6: memref<1x1x32x32xf32, #tpu.memory_space<vmem>>) attributes {dimension_semantics = [#tpu.dimension_semantics<parallel>, #tpu.dimension_semantics<parallel>, #tpu.dimension_semantics<arbitrary>], iteration_bounds = array<i64: 2, 1, 1>, scalar_prefetch = 0 : i64, scratch_operands = 0 : i64, tpu.core_type = #tpu.core_type<tc>, window_params = [{pipeline_mode = #tpu.pipeline_mode<synchronous>, transform_indices = @transform_0, window_bounds = array<i64: 32, 1>}, {transform_indices = @transform_1, window_bounds = array<i64: 1, 1, 1, 1024>}, {transform_indices = @transform_2, window_bounds = array<i64: 1, 1, 1, 1024>}, {transform_indices = @transform_3, window_bounds = array<i64: 1, 1, 32, 32>}]} {
    %c0_i32 = arith.constant 0 : i32
    %0 = arith.cmpi eq, %arg2, %c0_i32 : i32
    %1 = arith.extui %0 : i1 to i32
    %c0_i32_0 = arith.constant 0 : i32
    %2 = arith.cmpi ne, %1, %c0_i32_0 : i32
    scf.if %2 {
      %cst_75 = arith.constant 0.000000e+00 : f32
      %211 = vector.broadcast %cst_75 : f32 to vector<1x1x32x32xf32>
      %c0_76 = arith.constant 0 : index
      %c0_77 = arith.constant 0 : index
      %c0_78 = arith.constant 0 : index
      %c0_79 = arith.constant 0 : index
      %212 = vector.load %arg6[%c0_76, %c0_77, %c0_78, %c0_79] : memref<1x1x32x32xf32, #tpu.memory_space<vmem>>, vector<1x1x32x32xf32>
      tpu.vector_store %arg6[%c0_76, %c0_77, %c0_78, %c0_79], %211 {strides = array<i32>} : memref<1x1x32x32xf32, #tpu.memory_space<vmem>>, vector<1x1x32x32xf32>,
    } else {
    }
    %c0 = arith.constant 0 : index
    %c0_1 = arith.constant 0 : index
    %3 = vector.load %arg3[%c0, %c0_1] : memref<32x1xf32, #tpu.memory_space<vmem>>, vector<32x1xf32>
    %cst = arith.constant 0.000000e+00 : f32
    %4 = vector.broadcast %cst : f32 to vector<32x32xf32>
    %cst_2 = arith.constant -4.805000e+02 : f32
    %c0_i32_3 = arith.constant 0 : i32
    %c256_i32 = arith.constant 256 : i32
    %5 = arith.muli %c0_i32_3, %c256_i32 : i32
    %6 = tpu.assume_multiple %5, 256 : i32
    %c0_4 = arith.constant 0 : index
    %c0_5 = arith.constant 0 : index
    %c0_6 = arith.constant 0 : index
    %7 = arith.index_cast %6 : i32 to index
    %8 = vector.load %arg4[%c0_4, %c0_5, %c0_6, %7] : memref<1x1x1x1024xf32, #tpu.memory_space<vmem>>, vector<1x1x1x256xf32>
    %9 = vector.shape_cast %8 : vector<1x1x1x256xf32> to vector<1x256xf32>
    %cst_7 = arith.constant 0.000000e+00 : f32
    %cst_8 = arith.constant 1.000000e+00 : f32
    %10 = vector.broadcast %cst_7 : f32 to vector<1x256xf32>
    %11 = arith.maximumf %10, %9 : vector<1x256xf32>
    %12 = vector.broadcast %cst_8 : f32 to vector<1x256xf32>
    %13 = arith.minimumf %12, %11 : vector<1x256xf32>
    %c0_9 = arith.constant 0 : index
    %c0_10 = arith.constant 0 : index
    %c0_11 = arith.constant 0 : index
    %14 = arith.index_cast %6 : i32 to index
    %15 = vector.load %arg5[%c0_9, %c0_10, %c0_11, %14] : memref<1x1x1x1024xf32, #tpu.memory_space<vmem>>, vector<1x1x1x256xf32>
    %16 = vector.shape_cast %15 : vector<1x1x1x256xf32> to vector<1x256xf32>
    %cst_12 = arith.constant 0.000000e+00 : f32
    %cst_13 = arith.constant 1.000000e+00 : f32
    %17 = vector.broadcast %cst_12 : f32 to vector<1x256xf32>
    %18 = arith.maximumf %17, %16 : vector<1x256xf32>
    %19 = vector.broadcast %cst_13 : f32 to vector<1x256xf32>
    %20 = arith.minimumf %19, %18 : vector<1x256xf32>
    %21 = vector.broadcast %13 : vector<1x256xf32> to vector<32x256xf32>
    %22 = vector.broadcast %3 : vector<32x1xf32> to vector<32x256xf32>
    %23 = arith.subf %21, %22 : vector<32x256xf32>
    %24 = arith.mulf %23, %23 : vector<32x256xf32>
    %25 = vector.broadcast %cst_2 : f32 to vector<32x256xf32>
    %26 = arith.mulf %24, %25 : vector<32x256xf32>
    %27 = vector.broadcast %20 : vector<1x256xf32> to vector<32x256xf32>
    %28 = vector.broadcast %3 : vector<32x1xf32> to vector<32x256xf32>
    %29 = arith.subf %27, %28 : vector<32x256xf32>
    %30 = arith.mulf %29, %29 : vector<32x256xf32>
    %31 = vector.broadcast %cst_2 : f32 to vector<32x256xf32>
    %32 = arith.mulf %30, %31 : vector<32x256xf32>
    %33 = math.exp %26 : vector<32x256xf32>
    %34 = math.exp %32 : vector<32x256xf32>
    %cst_14 = arith.constant dense<0.000000e+00> : vector<256xf32>
    %35 = vector.multi_reduction <add>, %33, %cst_14 [0] : vector<32x256xf32> to vector<256xf32>
    %36 = vector.shape_cast %35 : vector<256xf32> to vector<1x256xf32>
    %cst_15 = arith.constant dense<0.000000e+00> : vector<256xf32>
    %37 = vector.multi_reduction <add>, %34, %cst_15 [0] : vector<32x256xf32> to vector<256xf32>
    %38 = vector.shape_cast %37 : vector<256xf32> to vector<1x256xf32>
    %39 = tpu.reciprocal %36 {approx = true} : vector<1x256xf32> -> vector<1x256xf32>
    %40 = tpu.reciprocal %38 {approx = true} : vector<1x256xf32> -> vector<1x256xf32>
    %41 = arith.mulf %36, %39 : vector<1x256xf32>
    %cst_16 = arith.constant 2.000000e+00 : f32
    %42 = vector.broadcast %cst_16 : f32 to vector<1x256xf32>
    %43 = arith.subf %42, %41 : vector<1x256xf32>
    %44 = arith.mulf %39, %43 : vector<1x256xf32>
    %45 = arith.mulf %38, %40 : vector<1x256xf32>
    %cst_17 = arith.constant 2.000000e+00 : f32
    %46 = vector.broadcast %cst_17 : f32 to vector<1x256xf32>
    %47 = arith.subf %46, %45 : vector<1x256xf32>
    %48 = arith.mulf %40, %47 : vector<1x256xf32>
    %49 = vector.broadcast %44 : vector<1x256xf32> to vector<32x256xf32>
    %50 = arith.mulf %33, %49 : vector<32x256xf32>
    %51 = vector.broadcast %48 : vector<1x256xf32> to vector<32x256xf32>
    %52 = arith.mulf %34, %51 : vector<32x256xf32>
    %cst_18 = arith.constant dense<0.000000e+00> : vector<32x32xf32>
    %53 = tpu.matmul %50, %52, %cst_18 {dimension_numbers = #tpu.dot_dimension_numbers<[1], [1], [0], [0], [0, 0, 1, 0], [], []>} : vector<32x256xf32>, vector<32x256xf32>, vector<32x32xf32> -> vector<32x32xf32>
    %54 = arith.addf %4, %53 : vector<32x32xf32>
    %c1_i32 = arith.constant 1 : i32
    %c256_i32_19 = arith.constant 256 : i32
    %55 = arith.muli %c1_i32, %c256_i32_19 : i32
    %56 = tpu.assume_multiple %55, 256 : i32
    %c0_20 = arith.constant 0 : index
    %c0_21 = arith.constant 0 : index
    %c0_22 = arith.constant 0 : index
    %57 = arith.index_cast %56 : i32 to index
    %58 = vector.load %arg4[%c0_20, %c0_21, %c0_22, %57] : memref<1x1x1x1024xf32, #tpu.memory_space<vmem>>, vector<1x1x1x256xf32>
    %59 = vector.shape_cast %58 : vector<1x1x1x256xf32> to vector<1x256xf32>
    %cst_23 = arith.constant 0.000000e+00 : f32
    %cst_24 = arith.constant 1.000000e+00 : f32
    %60 = vector.broadcast %cst_23 : f32 to vector<1x256xf32>
    %61 = arith.maximumf %60, %59 : vector<1x256xf32>
    %62 = vector.broadcast %cst_24 : f32 to vector<1x256xf32>
    %63 = arith.minimumf %62, %61 : vector<1x256xf32>
    %c0_25 = arith.constant 0 : index
    %c0_26 = arith.constant 0 : index
    %c0_27 = arith.constant 0 : index
    %64 = arith.index_cast %56 : i32 to index
    %65 = vector.load %arg5[%c0_25, %c0_26, %c0_27, %64] : memref<1x1x1x1024xf32, #tpu.memory_space<vmem>>, vector<1x1x1x256xf32>
    %66 = vector.shape_cast %65 : vector<1x1x1x256xf32> to vector<1x256xf32>
    %cst_28 = arith.constant 0.000000e+00 : f32
    %cst_29 = arith.constant 1.000000e+00 : f32
    %67 = vector.broadcast %cst_28 : f32 to vector<1x256xf32>
    %68 = arith.maximumf %67, %66 : vector<1x256xf32>
    %69 = vector.broadcast %cst_29 : f32 to vector<1x256xf32>
    %70 = arith.minimumf %69, %68 : vector<1x256xf32>
    %71 = vector.broadcast %63 : vector<1x256xf32> to vector<32x256xf32>
    %72 = vector.broadcast %3 : vector<32x1xf32> to vector<32x256xf32>
    %73 = arith.subf %71, %72 : vector<32x256xf32>
    %74 = arith.mulf %73, %73 : vector<32x256xf32>
    %75 = vector.broadcast %cst_2 : f32 to vector<32x256xf32>
    %76 = arith.mulf %74, %75 : vector<32x256xf32>
    %77 = vector.broadcast %70 : vector<1x256xf32> to vector<32x256xf32>
    %78 = vector.broadcast %3 : vector<32x1xf32> to vector<32x256xf32>
    %79 = arith.subf %77, %78 : vector<32x256xf32>
    %80 = arith.mulf %79, %79 : vector<32x256xf32>
    %81 = vector.broadcast %cst_2 : f32 to vector<32x256xf32>
    %82 = arith.mulf %80, %81 : vector<32x256xf32>
    %83 = math.exp %76 : vector<32x256xf32>
    %84 = math.exp %82 : vector<32x256xf32>
    %cst_30 = arith.constant dense<0.000000e+00> : vector<256xf32>
    %85 = vector.multi_reduction <add>, %83, %cst_30 [0] : vector<32x256xf32> to vector<256xf32>
    %86 = vector.shape_cast %85 : vector<256xf32> to vector<1x256xf32>
    %cst_31 = arith.constant dense<0.000000e+00> : vector<256xf32>
    %87 = vector.multi_reduction <add>, %84, %cst_31 [0] : vector<32x256xf32> to vector<256xf32>
    %88 = vector.shape_cast %87 : vector<256xf32> to vector<1x256xf32>
    %89 = tpu.reciprocal %86 {approx = true} : vector<1x256xf32> -> vector<1x256xf32>
    %90 = tpu.reciprocal %88 {approx = true} : vector<1x256xf32> -> vector<1x256xf32>
    %91 = arith.mulf %86, %89 : vector<1x256xf32>
    %cst_32 = arith.constant 2.000000e+00 : f32
    %92 = vector.broadcast %cst_32 : f32 to vector<1x256xf32>
    %93 = arith.subf %92, %91 : vector<1x256xf32>
    %94 = arith.mulf %89, %93 : vector<1x256xf32>
    %95 = arith.mulf %88, %90 : vector<1x256xf32>
    %cst_33 = arith.constant 2.000000e+00 : f32
    %96 = vector.broadcast %cst_33 : f32 to vector<1x256xf32>
    %97 = arith.subf %96, %95 : vector<1x256xf32>
    %98 = arith.mulf %90, %97 : vector<1x256xf32>
    %99 = vector.broadcast %94 : vector<1x256xf32> to vector<32x256xf32>
    %100 = arith.mulf %83, %99 : vector<32x256xf32>
    %101 = vector.broadcast %98 : vector<1x256xf32> to vector<32x256xf32>
    %102 = arith.mulf %84, %101 : vector<32x256xf32>
    %cst_34 = arith.constant dense<0.000000e+00> : vector<32x32xf32>
    %103 = tpu.matmul %100, %102, %cst_34 {dimension_numbers = #tpu.dot_dimension_numbers<[1], [1], [0], [0], [0, 0, 1, 0], [], []>} : vector<32x256xf32>, vector<32x256xf32>, vector<32x32xf32> -> vector<32x32xf32>
    %104 = arith.addf %54, %103 : vector<32x32xf32>
    %c2_i32 = arith.constant 2 : i32
    %c256_i32_35 = arith.constant 256 : i32
    %105 = arith.muli %c2_i32, %c256_i32_35 : i32
    %106 = tpu.assume_multiple %105, 256 : i32
    %c0_36 = arith.constant 0 : index
    %c0_37 = arith.constant 0 : index
    %c0_38 = arith.constant 0 : index
    %107 = arith.index_cast %106 : i32 to index
    %108 = vector.load %arg4[%c0_36, %c0_37, %c0_38, %107] : memref<1x1x1x1024xf32, #tpu.memory_space<vmem>>, vector<1x1x1x256xf32>
    %109 = vector.shape_cast %108 : vector<1x1x1x256xf32> to vector<1x256xf32>
    %cst_39 = arith.constant 0.000000e+00 : f32
    %cst_40 = arith.constant 1.000000e+00 : f32
    %110 = vector.broadcast %cst_39 : f32 to vector<1x256xf32>
    %111 = arith.maximumf %110, %109 : vector<1x256xf32>
    %112 = vector.broadcast %cst_40 : f32 to vector<1x256xf32>
    %113 = arith.minimumf %112, %111 : vector<1x256xf32>
    %c0_41 = arith.constant 0 : index
    %c0_42 = arith.constant 0 : index
    %c0_43 = arith.constant 0 : index
    %114 = arith.index_cast %106 : i32 to index
    %115 = vector.load %arg5[%c0_41, %c0_42, %c0_43, %114] : memref<1x1x1x1024xf32, #tpu.memory_space<vmem>>, vector<1x1x1x256xf32>
    %116 = vector.shape_cast %115 : vector<1x1x1x256xf32> to vector<1x256xf32>
    %cst_44 = arith.constant 0.000000e+00 : f32
    %cst_45 = arith.constant 1.000000e+00 : f32
    %117 = vector.broadcast %cst_44 : f32 to vector<1x256xf32>
    %118 = arith.maximumf %117, %116 : vector<1x256xf32>
    %119 = vector.broadcast %cst_45 : f32 to vector<1x256xf32>
    %120 = arith.minimumf %119, %118 : vector<1x256xf32>
    %121 = vector.broadcast %113 : vector<1x256xf32> to vector<32x256xf32>
    %122 = vector.broadcast %3 : vector<32x1xf32> to vector<32x256xf32>
    %123 = arith.subf %121, %122 : vector<32x256xf32>
    %124 = arith.mulf %123, %123 : vector<32x256xf32>
    %125 = vector.broadcast %cst_2 : f32 to vector<32x256xf32>
    %126 = arith.mulf %124, %125 : vector<32x256xf32>
    %127 = vector.broadcast %120 : vector<1x256xf32> to vector<32x256xf32>
    %128 = vector.broadcast %3 : vector<32x1xf32> to vector<32x256xf32>
    %129 = arith.subf %127, %128 : vector<32x256xf32>
    %130 = arith.mulf %129, %129 : vector<32x256xf32>
    %131 = vector.broadcast %cst_2 : f32 to vector<32x256xf32>
    %132 = arith.mulf %130, %131 : vector<32x256xf32>
    %133 = math.exp %126 : vector<32x256xf32>
    %134 = math.exp %132 : vector<32x256xf32>
    %cst_46 = arith.constant dense<0.000000e+00> : vector<256xf32>
    %135 = vector.multi_reduction <add>, %133, %cst_46 [0] : vector<32x256xf32> to vector<256xf32>
    %136 = vector.shape_cast %135 : vector<256xf32> to vector<1x256xf32>
    %cst_47 = arith.constant dense<0.000000e+00> : vector<256xf32>
    %137 = vector.multi_reduction <add>, %134, %cst_47 [0] : vector<32x256xf32> to vector<256xf32>
    %138 = vector.shape_cast %137 : vector<256xf32> to vector<1x256xf32>
    %139 = tpu.reciprocal %136 {approx = true} : vector<1x256xf32> -> vector<1x256xf32>
    %140 = tpu.reciprocal %138 {approx = true} : vector<1x256xf32> -> vector<1x256xf32>
    %141 = arith.mulf %136, %139 : vector<1x256xf32>
    %cst_48 = arith.constant 2.000000e+00 : f32
    %142 = vector.broadcast %cst_48 : f32 to vector<1x256xf32>
    %143 = arith.subf %142, %141 : vector<1x256xf32>
    %144 = arith.mulf %139, %143 : vector<1x256xf32>
    %145 = arith.mulf %138, %140 : vector<1x256xf32>
    %cst_49 = arith.constant 2.000000e+00 : f32
    %146 = vector.broadcast %cst_49 : f32 to vector<1x256xf32>
    %147 = arith.subf %146, %145 : vector<1x256xf32>
    %148 = arith.mulf %140, %147 : vector<1x256xf32>
    %149 = vector.broadcast %144 : vector<1x256xf32> to vector<32x256xf32>
    %150 = arith.mulf %133, %149 : vector<32x256xf32>
    %151 = vector.broadcast %148 : vector<1x256xf32> to vector<32x256xf32>
    %152 = arith.mulf %134, %151 : vector<32x256xf32>
    %cst_50 = arith.constant dense<0.000000e+00> : vector<32x32xf32>
    %153 = tpu.matmul %150, %152, %cst_50 {dimension_numbers = #tpu.dot_dimension_numbers<[1], [1], [0], [0], [0, 0, 1, 0], [], []>} : vector<32x256xf32>, vector<32x256xf32>, vector<32x32xf32> -> vector<32x32xf32>
    %154 = arith.addf %104, %153 : vector<32x32xf32>
    %c3_i32 = arith.constant 3 : i32
    %c256_i32_51 = arith.constant 256 : i32
    %155 = arith.muli %c3_i32, %c256_i32_51 : i32
    %156 = tpu.assume_multiple %155, 256 : i32
    %c0_52 = arith.constant 0 : index
    %c0_53 = arith.constant 0 : index
    %c0_54 = arith.constant 0 : index
    %157 = arith.index_cast %156 : i32 to index
    %158 = vector.load %arg4[%c0_52, %c0_53, %c0_54, %157] : memref<1x1x1x1024xf32, #tpu.memory_space<vmem>>, vector<1x1x1x256xf32>
    %159 = vector.shape_cast %158 : vector<1x1x1x256xf32> to vector<1x256xf32>
    %cst_55 = arith.constant 0.000000e+00 : f32
    %cst_56 = arith.constant 1.000000e+00 : f32
    %160 = vector.broadcast %cst_55 : f32 to vector<1x256xf32>
    %161 = arith.maximumf %160, %159 : vector<1x256xf32>
    %162 = vector.broadcast %cst_56 : f32 to vector<1x256xf32>
    %163 = arith.minimumf %162, %161 : vector<1x256xf32>
    %c0_57 = arith.constant 0 : index
    %c0_58 = arith.constant 0 : index
    %c0_59 = arith.constant 0 : index
    %164 = arith.index_cast %156 : i32 to index
    %165 = vector.load %arg5[%c0_57, %c0_58, %c0_59, %164] : memref<1x1x1x1024xf32, #tpu.memory_space<vmem>>, vector<1x1x1x256xf32>
    %166 = vector.shape_cast %165 : vector<1x1x1x256xf32> to vector<1x256xf32>
    %cst_60 = arith.constant 0.000000e+00 : f32
    %cst_61 = arith.constant 1.000000e+00 : f32
    %167 = vector.broadcast %cst_60 : f32 to vector<1x256xf32>
    %168 = arith.maximumf %167, %166 : vector<1x256xf32>
    %169 = vector.broadcast %cst_61 : f32 to vector<1x256xf32>
    %170 = arith.minimumf %169, %168 : vector<1x256xf32>
    %171 = vector.broadcast %163 : vector<1x256xf32> to vector<32x256xf32>
    %172 = vector.broadcast %3 : vector<32x1xf32> to vector<32x256xf32>
    %173 = arith.subf %171, %172 : vector<32x256xf32>
    %174 = arith.mulf %173, %173 : vector<32x256xf32>
    %175 = vector.broadcast %cst_2 : f32 to vector<32x256xf32>
    %176 = arith.mulf %174, %175 : vector<32x256xf32>
    %177 = vector.broadcast %170 : vector<1x256xf32> to vector<32x256xf32>
    %178 = vector.broadcast %3 : vector<32x1xf32> to vector<32x256xf32>
    %179 = arith.subf %177, %178 : vector<32x256xf32>
    %180 = arith.mulf %179, %179 : vector<32x256xf32>
    %181 = vector.broadcast %cst_2 : f32 to vector<32x256xf32>
    %182 = arith.mulf %180, %181 : vector<32x256xf32>
    %183 = math.exp %176 : vector<32x256xf32>
    %184 = math.exp %182 : vector<32x256xf32>
    %cst_62 = arith.constant dense<0.000000e+00> : vector<256xf32>
    %185 = vector.multi_reduction <add>, %183, %cst_62 [0] : vector<32x256xf32> to vector<256xf32>
    %186 = vector.shape_cast %185 : vector<256xf32> to vector<1x256xf32>
    %cst_63 = arith.constant dense<0.000000e+00> : vector<256xf32>
    %187 = vector.multi_reduction <add>, %184, %cst_63 [0] : vector<32x256xf32> to vector<256xf32>
    %188 = vector.shape_cast %187 : vector<256xf32> to vector<1x256xf32>
    %189 = tpu.reciprocal %186 {approx = true} : vector<1x256xf32> -> vector<1x256xf32>
    %190 = tpu.reciprocal %188 {approx = true} : vector<1x256xf32> -> vector<1x256xf32>
    %191 = arith.mulf %186, %189 : vector<1x256xf32>
    %cst_64 = arith.constant 2.000000e+00 : f32
    %192 = vector.broadcast %cst_64 : f32 to vector<1x256xf32>
    %193 = arith.subf %192, %191 : vector<1x256xf32>
    %194 = arith.mulf %189, %193 : vector<1x256xf32>
    %195 = arith.mulf %188, %190 : vector<1x256xf32>
    %cst_65 = arith.constant 2.000000e+00 : f32
    %196 = vector.broadcast %cst_65 : f32 to vector<1x256xf32>
    %197 = arith.subf %196, %195 : vector<1x256xf32>
    %198 = arith.mulf %190, %197 : vector<1x256xf32>
    %199 = vector.broadcast %194 : vector<1x256xf32> to vector<32x256xf32>
    %200 = arith.mulf %183, %199 : vector<32x256xf32>
    %201 = vector.broadcast %198 : vector<1x256xf32> to vector<32x256xf32>
    %202 = arith.mulf %184, %201 : vector<32x256xf32>
    %cst_66 = arith.constant dense<0.000000e+00> : vector<32x32xf32>
    %203 = tpu.matmul %200, %202, %cst_66 {dimension_numbers = #tpu.dot_dimension_numbers<[1], [1], [0], [0], [0, 0, 1, 0], [], []>} : vector<32x256xf32>, vector<32x256xf32>, vector<32x32xf32> -> vector<32x32xf32>
    %204 = arith.addf %154, %203 : vector<32x32xf32>
    %c4_i32 = arith.constant 4 : i32
    %c0_67 = arith.constant 0 : index
    %c0_68 = arith.constant 0 : index
    %c0_69 = arith.constant 0 : index
    %c0_70 = arith.constant 0 : index
    %205 = vector.load %arg6[%c0_67, %c0_68, %c0_69, %c0_70] : memref<1x1x32x32xf32, #tpu.memory_space<vmem>>, vector<1x1x32x32xf32>
    %206 = vector.shape_cast %205 : vector<1x1x32x32xf32> to vector<32x32xf32>
    %207 = arith.addf %206, %204 : vector<32x32xf32>
    %c0_71 = arith.constant 0 : index
    %c0_72 = arith.constant 0 : index
    %c0_73 = arith.constant 0 : index
    %c0_74 = arith.constant 0 : index
    %208 = vector.load %arg6[%c0_71, %c0_72, %c0_73, %c0_74] : memref<1x1x32x32xf32, #tpu.memory_space<vmem>>, vector<1x1x32x32xf32>
    %209 = vector.shape_cast %208 : vector<1x1x32x32xf32> to vector<32x32xf32>
    %210 = vector.shape_cast %207 : vector<32x32xf32> to vector<1x1x32x32xf32>
    tpu.vector_store %arg6[%c0_71, %c0_72, %c0_73, %c0_74], %210 {strides = array<i32>} : memref<1x1x32x32xf32, #tpu.memory_space<vmem>>, vector<1x1x32x32xf32>,
    return
  }
  func.func @transform_0(%arg0: i32, %arg1: i32, %arg2: i32) -> (i32, i32) {
    %c0_i32 = arith.constant 0 : i32
    %c0_i32_0 = arith.constant 0 : i32
    %c0_i32_1 = arith.constant 0 : i32
    return %c0_i32, %c0_i32_0 : i32, i32
  }
  func.func @transform_1(%arg0: i32, %arg1: i32, %arg2: i32) -> (i32, i32, i32, i32) {
    %c0_i32 = arith.constant 0 : i32
    %c0_i32_0 = arith.constant 0 : i32
    return %arg0, %arg1, %c0_i32, %arg2 : i32, i32, i32, i32
  }
  func.func @transform_2(%arg0: i32, %arg1: i32, %arg2: i32) -> (i32, i32, i32, i32) {
    %c0_i32 = arith.constant 0 : i32
    %c0_i32_0 = arith.constant 0 : i32
    return %arg0, %arg1, %c0_i32, %arg2 : i32, i32, i32, i32
  }
  func.func @transform_3(%arg0: i32, %arg1: i32, %arg2: i32) -> (i32, i32, i32, i32) {
    %c0_i32 = arith.constant 0 : i32
    %c0_i32_0 = arith.constant 0 : i32
    %c0_i32_1 = arith.constant 0 : i32
    return %arg0, %arg1, %c0_i32, %c0_i32_0 : i32, i32, i32, i32
  }
}

</mosaic_0001>

<bundles_post_ra>
// kernel: tpu_custom_call.1
= control target key start
LH: loop header
LB: loop body
LE: loop exit
PB: predicated region body
PF: predicated region fallthrough
CT: control target
= control target key end

     0   :  { %8 = vsyncpa [#allocation3], 0  ;;  %s2519_s0 = inlined_call_operand.vmem [shape: f32[32,1], index: 0, kind: input, shape index: {}]   ;;  %s2520_s1 = inlined_call_operand.vmem [shape: f32[2,1,1,1024], index: 1, kind: input, shape index: {}]   ;;  %s2521_s2 = inlined_call_operand.vmem [shape: f32[2,1,1,1024], index: 2, kind: input, shape index: {}]   ;;  %s2522_s3 = inlined_call_operand.hbm [shape: f32[2,1,32,32], index: 3, kind: output, shape index: {}]  }
   0x1   :  { %10 = vsyncpa [#allocation3 + $0x1], 0  ;;  %s1868_s12 = smov 0   ;;  %s1870_s13 = smov 0  }
   0x2   :  { %s1872_s14 = smov 0   ;;  %s1874_s15 = smov 0  }
   0x3   :  { %s1876_s16 = smov 0   ;;  %s1878_s17 = smov 0  }
   0x4 LB: > { %s1490_s18 = sadd.s32 4294967295, %s1841_s17   ;;  %s1491_s19 = sadd.s32 4294967294, %s1841_s17   ;;  %s1841_s17 = sphi %s1878_s17, %s16_s17   ;;  %s1837_s16 = sphi %s1876_s16, %s2536_s16   ;;  %s1833_s15 = sphi %s1874_s15, %s2535_s15   ;;  %s1829_s14 = sphi %s1872_s14, %s2534_s14   ;;  %s1825_s13 = sphi %s1870_s13, %s2533_s13   ;;  %s1821_s12 = sphi %s1868_s12, %s2532_s12  }
   0x5   : > { %s35_s20 = sadd.s32 1, %s1837_s16  ;;  %s125_s21 = sadd.s32 1, %s1829_s14 }
   0x6   : > { %p37_p0 = scmp.ge.s32.totalorder %s35_s20, 2  ;;  %p135_p1 = scmp.ne.s32.totalorder %s1829_s14, %s1825_s13 }
   0x7   : > { %p136_p2 = scmp.eq.s32.totalorder %s1490_s18, 1  ;;  %p141_p3 = scmp.ne.s32.totalorder %s1825_s13, %s1821_s12 }
   0x8   : > { %s2538_s20 = smov (%p37_p0, %s35_s20), 0  ;;  %p142_p5 = scmp.eq.s32.totalorder %s1491_s19, 1 }
   0x9   : > { %p1908_p4 = por %p136_p2, %p135_p1  ;;  %s120_s23 = ssub.s32 %s1837_s16, %s2538_s20 }
   0xa   : > { %p1494_p6 = scmp.ge.s32.totalorder %s1841_s17, 1  ;;  %p123_p7 = scmp.eq.s32.totalorder %s120_s23, 0 }
   0xb   : > { %p1915_p8 = por %p142_p5, %p141_p3  ;;  %p195_p9 = scmp.lt.s32.totalorder %s1841_s17, 3 }
   0xc   : > { %s1921_s25 = scalar_select %p123_p7, %s1829_s14, %s125_s21  }
   0xd   : > { %p196_p10 = pnand %p1494_p6, %p195_p9 }
   0xf   : > { %199 = sbr.rel (%p196_p10) target bundleno = 577 (0x241), region = 32 }
  0x16   : > { %v275_v0 = vld [vmem:[%s2519_s0 + $0x10] sm:$0xff]  ;;  %v273_v1 = vld [vmem:[%s2519_s0] sm:$0xff]  ;;  %v1843_v2 = vmov 0   ;;  %v276_v3 = vld [vmem:[%s2519_s0 + $0x18] sm:$0xff]  ;;  %p239_p11 = scmp.lt.s32.totalorder %s1833_s15, 1  ;;  %v284_v5 = vlaneseq  ;;  %s235_s23 = sand.u32 1, %s1825_s13  }
  0x17   : > { %1602 = vset.pattern.permute.xlu1 %v1843_v2  ;;  %1601 = vset.pattern.permute.xlu0 %v1843_v2  ;;  %v274_v4 = vld [vmem:[%s2519_s0 + $0x8] sm:$0xff]  ;;  %vm268_vm0 = vcmask 261120   ;;  %s1495_s26 = sshll.u32 %s235_s23, 5  ;;  %s1509_s28 = sshll.u32 %s1833_s15, 9 }
  0x18   : > { %306 = vperm.xlu1 %1602, %v275_v0   ;;  %296 = vperm.xlu0 %1601, %v273_v1   ;;  %s240_s7 = scalar_select %p239_p11, %s1833_s15, 1  ;;  %v285_v12 = vshrl.u32 %v284_v5, 7 }
  0x19   : > { %s2440_s27 = scalar_lea.vmem [#allocation2], %s1495_s26  ;;  %s2465_s5 = scalar_lea.hbm %s2522_s3, %s1509_s28 }
  0x1a   : > { %s1496_s8 = sshll.u32 %s240_s7, 3  ;;  %v1947_v19 = vsub.s32 1, %v285_v12  ;;  %v1949_v24 = vsub.s32 0, %v285_v12  ;;  %s1384_s29 = sshll.u32 %s2440_s27, 4  ;;  %s2467_s29 = int_to_ptr.vmem [resolvable:$true] %s1384_s29 }
  0x1b   : > { %s1940_s11 = scalar_lea.vmem %s2520_s1, %s1496_s8  ;;  %s262_s21 = scalar_lea.vmem %s2521_s2, %s1496_s8 }
  0x1c   : > { %311 = vperm.xlu1 %1602, %v276_v3   ;;  %301 = vperm.xlu0 %1601, %v274_v4   ;;  %v1498_v6 = vld [vmem:[%s1940_s11 + $0x2] sm:$0x3]  ;;  %v277_v7 = vld [vmem:[%s1940_s11] sm:$0x3]  ;;  %v1501_v10 = vld [vmem:[%s262_s21 + $0x4] sm:$0x3] }
  0x1d   : > { %v1499_v8 = vld [vmem:[%s262_s21 + $0x2] sm:$0x3]  ;;  %v280_v9 = vld [vmem:[%s262_s21] sm:$0x3]  ;;  %v1503_v11 = vld [vmem:[%s262_s21 + $0x6] sm:$0x3] }
  0x1e   : > { %v475_v13 = vmax.f32 %v1498_v6, 0.0  ;;  %v278_v14 = vmax.f32 %v277_v7, 0.0  ;;  %v479_v15 = vmax.f32 %v1499_v8, 0.0  ;;  %v281_v16 = vmax.f32 %v280_v9, 0.0  ;;  %v1954_v29 = vld [vmem:[%s1940_s11 + $0x4] sm:$0x3] }
  0x1f   : > { %v827_v17 = vmax.f32 %v1501_v10, 0.0  ;;  %v1094_v18 = vmax.f32 %v1503_v11, 0.0  ;;  %s2473_s15 = scalar_lea.sflag [#allocation3], %s235_s23  ;;  %s1763_s6 = scalar_lea.vmem %s2467_s29, 512 }
  0x20   : > { %v476_v20 = vmin.f32 %v475_v13, 1.0  ;;  %v279_v21 = vmin.f32 %v278_v14, 1.0  ;;  %v480_v22 = vmin.f32 %v479_v15, 1.0  ;;  %v282_v23 = vmin.f32 %v281_v16, 1.0  ;;  %p1764_p12 = scmp.ne.s32.totalorder %s2467_s29, %s1763_s6  ;;  %s1845_s7 = smov [#allocation2]  }
  0x21   : > { %v828_v25 = vmin.f32 %v827_v17, 1.0  ;;  %v1095_v26 = vmin.f32 %v1094_v18, 1.0  ;;  %s1767_s8 = sshll.u32 %s1845_s7, 4  ;;  %s1768_s8 = int_to_ptr.vmem [resolvable:$false] %s1767_s8 }
  0x22   : > { %v489_v27 = vrot.slane %v476_v20, %v1947_v19  ;;  %v291_v28 = vrot.slane %v279_v21, %v1947_v19  ;;  %v524_v30 = vrot.slane %v480_v22, %v1947_v19  ;;  %v1958_v31 = vrot.slane %v282_v23, %v1947_v19  ;;  %p1765_p13 = pnand %p1764_p12, %p1908_p4  ;;  %s1769_s9 = scalar_lea.vmem %s1768_s8, 1024 }
  0x23   : > { %v1961_v32 = vrot.slane %v480_v22, %v1949_v24  ;;  %v1964_v33 = vrot.slane %v282_v23, %v1949_v24  ;;  %v1967_v34 = vrot.slane %v828_v25, %v1947_v19  ;;  %v1970_v35 = vrot.slane %v1095_v26, %v1947_v19  ;;  %p1770_p1 = scmp.lt.s32.totalorder %s2467_s29, %s1768_s8  ;;  %p1771_p2 = scmp.lt.s32.totalorder %s1769_s9, %s1763_s6 }
  0x24   : > { %v1973_v36 = vrot.slane %v476_v20, %v1949_v24  ;;  %v1980_v39 = vrot.slane %v279_v21, %v1949_v24  ;;  %v1983_v40 = vrot.slane %v828_v25, %v1949_v24  ;;  %v1986_v41 = vrot.slane %v1095_v26, %v1949_v24  ;;  %p1766_p0 = pneg %p1765_p13 }
  0x25   : > { %p1772_p3 = por %p1771_p2, %p1770_p1 }
  0x27   : > { %p1773_p5 = pnand %p1772_p3, %p1766_p0 }
  0x97   : > { %v1975_v37 = vpop.permute.xlu1 %306  ;;  %v1977_v38 = vpop.permute.xlu0 %296 }
  0x98   : > { %v493_v43 = vsub.f32 %v489_v27, %v1977_v38  ;;  %v497_v44 = vsub.f32 %v489_v27, %v1975_v37  ;;  %v315_v45 = vsub.f32 %v291_v28, %v1977_v38  ;;  %v319_v46 = vsub.f32 %v291_v28, %v1975_v37 }
  0x99   : > { %v528_v47 = vsub.f32 %v524_v30, %v1977_v38  ;;  %v532_v48 = vsub.f32 %v524_v30, %v1975_v37  ;;  %v350_v49 = vsub.f32 %v1958_v31, %v1977_v38  ;;  %v354_v50 = vsub.f32 %v1958_v31, %v1975_v37 }
  0x9a   : > { %v501_v51 = vmul.f32 %v493_v43, %v493_v43  ;;  %v505_v52 = vmul.f32 %v497_v44, %v497_v44  ;;  %v323_v53 = vmul.f32 %v315_v45, %v315_v45  ;;  %v327_v54 = vmul.f32 %v319_v46, %v319_v46 }
  0x9b   : > { %v1999_v55 = vpop.permute.xlu1 %311  ;;  %v2001_v56 = vpop.permute.xlu0 %301  ;;  %v536_v57 = vmul.f32 %v528_v47, %v528_v47  ;;  %v540_v58 = vmul.f32 %v532_v48, %v532_v48  ;;  %v358_v59 = vmul.f32 %v350_v49, %v350_v49  ;;  %v362_v60 = vmul.f32 %v354_v50, %v354_v50 }
  0x9c   : > { %v495_v61 = vsub.f32 %v489_v27, %v2001_v56  ;;  %v499_v62 = vsub.f32 %v489_v27, %v1999_v55  ;;  %v509_v63 = vmul.f32 -480.5, %v501_v51  ;;  %v513_v0 = vmul.f32 -480.5, %v505_v52 }
  0x9d   : > { %v317_v1 = vsub.f32 %v291_v28, %v2001_v56  ;;  %v321_v2 = vsub.f32 %v291_v28, %v1999_v55  ;;  %v331_v3 = vmul.f32 -480.5, %v323_v53  ;;  %v335_v4 = vmul.f32 -480.5, %v327_v54 }
  0x9e   : > { %v503_v5 = vmul.f32 %v495_v61, %v495_v61  ;;  %v507_v6 = vmul.f32 %v499_v62, %v499_v62  ;;  %v553_v7 = vmul.f32 1.442695, %v509_v63  ;;  %v561_v8 = vmul.f32 1.442695, %v513_v0 }
  0x9f   : > { %v325_v9 = vmul.f32 %v317_v1, %v317_v1  ;;  %v329_v10 = vmul.f32 %v321_v2, %v321_v2  ;;  %v375_v11 = vmul.f32 1.442695, %v331_v3  ;;  %v383_v12 = vmul.f32 1.442695, %v335_v4 }
  0xa0   : > { %v511_v13 = vmul.f32 -480.5, %v503_v5  ;;  %v515_v14 = vmul.f32 -480.5, %v507_v6  ;;  %1603 = vpow2.f32 %v553_v7  ;;  %v530_v15 = vsub.f32 %v524_v30, %v2001_v56 }
  0xa1   : > { %1605 = vpow2.f32 %v561_v8  ;;  %v333_v16 = vmul.f32 -480.5, %v325_v9  ;;  %v337_v17 = vmul.f32 -480.5, %v329_v10  ;;  %v534_v18 = vsub.f32 %v524_v30, %v1999_v55 }
  0xa2   : > { %v557_v20 = vmul.f32 1.442695, %v511_v13  ;;  %v565_v21 = vmul.f32 1.442695, %v515_v14  ;;  %1607 = vpow2.f32 %v375_v11  ;;  %v538_v22 = vmul.f32 %v530_v15, %v530_v15 }
  0xa3   : > { %v379_v23 = vmul.f32 1.442695, %v333_v16  ;;  %1609 = vpow2.f32 %v383_v12  ;;  %v387_v25 = vmul.f32 1.442695, %v337_v17  ;;  %v542_v26 = vmul.f32 %v534_v18, %v534_v18 }
  0xa4   : > { %1611 = vpow2.f32 %v557_v20  ;;  %v544_v27 = vmul.f32 -480.5, %v536_v57  ;;  %v546_v28 = vmul.f32 -480.5, %v538_v22  ;;  %v548_v43 = vmul.f32 -480.5, %v540_v58 }
  0xa5   : > { %1613 = vpow2.f32 %v565_v21  ;;  %v550_v44 = vmul.f32 -480.5, %v542_v26  ;;  %v352_v45 = vsub.f32 %v1958_v31, %v2001_v56  ;;  %v356_v30 = vsub.f32 %v1958_v31, %v1999_v55 }
  0xa6   : > { %1615 = vpow2.f32 %v379_v23  ;;  %v569_v46 = vmul.f32 1.442695, %v544_v27  ;;  %v573_v47 = vmul.f32 1.442695, %v546_v28  ;;  %v577_v48 = vmul.f32 1.442695, %v548_v43 }
  0xa7   : > { %1617 = vpow2.f32 %v387_v25  ;;  %v581_v49 = vmul.f32 1.442695, %v550_v44  ;;  %v360_v50 = vmul.f32 %v352_v45, %v352_v45  ;;  %v364_v51 = vmul.f32 %v356_v30, %v356_v30 }
  0xa8   : > { %1619 = vpow2.f32 %v569_v46  ;;  %v366_v52 = vmul.f32 -480.5, %v358_v59  ;;  %v370_v53 = vmul.f32 -480.5, %v362_v60  ;;  %v527_v54 = vsub.f32 %v1961_v32, %v1977_v38 }
  0xa9   : > { %1621 = vpow2.f32 %v573_v47  ;;  %v368_v57 = vmul.f32 -480.5, %v360_v50  ;;  %v372_v58 = vmul.f32 -480.5, %v364_v51  ;;  %v529_v31 = vsub.f32 %v1961_v32, %v2001_v56 }
  0xaa   : > { %v2017_v61 = vpop.eup %1603  ;;  %1623 = vpow2.f32 %v577_v48  ;;  %v391_v62 = vmul.f32 1.442695, %v366_v52  ;;  %v399_v63 = vmul.f32 1.442695, %v370_v53  ;;  %v531_v0 = vsub.f32 %v1961_v32, %v1975_v37 }
  0xab   : > { %v2021_v1 = vpop.eup %1605  ;;  %1625 = vpow2.f32 %v581_v49  ;;  %v395_v59 = vmul.f32 1.442695, %v368_v57  ;;  %v403_v60 = vmul.f32 1.442695, %v372_v58  ;;  %v533_v2 = vsub.f32 %v1961_v32, %v1999_v55 }
  0xac   : > { %v2025_v3 = vpop.eup %1607  ;;  %1627 = vpow2.f32 %v391_v62  ;;  %v535_v4 = vmul.f32 %v527_v54, %v527_v54  ;;  %v537_v5 = vmul.f32 %v529_v31, %v529_v31  ;;  %v539_v6 = vmul.f32 %v531_v0, %v531_v0 }
  0xad   : > { %v2027_v7 = vpop.eup %1609  ;;  %1629 = vpow2.f32 %v395_v59  ;;  %v541_v8 = vmul.f32 %v533_v2, %v533_v2  ;;  %v349_v9 = vsub.f32 %v1964_v33, %v1977_v38  ;;  %v351_v10 = vsub.f32 %v1964_v33, %v2001_v56 }
  0xae   : > { %2527 = vst [vmem:[#allocation5_spill] sm:$0xff] %v2027_v7  ;;  %v2033_v11 = vpop.eup %1611  ;;  %1631 = vpow2.f32 %v399_v63  ;;  %v543_v32 = vmul.f32 -480.5, %v535_v4  ;;  %v545_v12 = vmul.f32 -480.5, %v537_v5  ;;  %v547_v13 = vmul.f32 -480.5, %v539_v6 }
  0xaf   : > { %v2035_v14 = vpop.eup %1613  ;;  %v592_v15 = vadd.f32 %v2033_v11, %v2017_v61  ;;  %1633 = vpow2.f32 %v403_v60  ;;  %v549_v16 = vmul.f32 -480.5, %v541_v8  ;;  %v353_v17 = vsub.f32 %v1964_v33, %v1975_v37 }
  0xb0   : > { %v2041_v18 = vpop.eup %1615  ;;  %v567_v20 = vmul.f32 1.442695, %v543_v32  ;;  %v571_v21 = vmul.f32 1.442695, %v545_v12  ;;  %v575_v22 = vmul.f32 1.442695, %v547_v13  ;;  %v355_v23 = vsub.f32 %v1964_v33, %v1999_v55 }
  0xb1   : > { %v2045_v25 = vpop.eup %1617  ;;  %v593_v26 = vadd.f32 %v2021_v1, %v592_v15  ;;  %v414_v27 = vadd.f32 %v2041_v18, %v2025_v3  ;;  %v579_v28 = vmul.f32 1.442695, %v549_v16  ;;  %v357_v43 = vmul.f32 %v349_v9, %v349_v9 }
  0xb2   : > { %2528 = vst [vmem:[#allocation6_spill] sm:$0xff] %v2045_v25  ;;  %v2050_v44 = vpop.eup %1619  ;;  %1635 = vpow2.f32 %v567_v20  ;;  %v359_v45 = vmul.f32 %v351_v10, %v351_v10  ;;  %v361_v30 = vmul.f32 %v353_v17, %v353_v17  ;;  %v363_v46 = vmul.f32 %v355_v23, %v355_v23 }
  0xb3   : > { %v2052_v47 = vpop.eup %1621  ;;  %v594_v48 = vadd.f32 %v2035_v14, %v593_v26  ;;  %v415_v33 = vadd.f32 %v2027_v7, %v414_v27  ;;  %1637 = vpow2.f32 %v571_v21  ;;  %v365_v49 = vmul.f32 -480.5, %v357_v43 }
  0xb4   : > { %v2056_v50 = vpop.eup %1623  ;;  %v610_v51 = vadd.f32 %v2052_v47, %v2050_v44  ;;  %1639 = vpow2.f32 %v575_v22  ;;  %v367_v52 = vmul.f32 -480.5, %v359_v45  ;;  %v369_v53 = vmul.f32 -480.5, %v361_v30 }
  0xb5   : > { %v2060_v54 = vpop.eup %1625  ;;  %v595_v57 = vrot.slane %v594_v48, 4  ;;  %v416_v58 = vadd.f32 %v2045_v25, %v415_v33  ;;  %1641 = vpow2.f32 %v579_v28  ;;  %v371_v31 = vmul.f32 -480.5, %v363_v46 }
  0xb6   : > { %v2063_v62 = vpop.eup %1627  ;;  %v611_v63 = vadd.f32 %v2056_v50, %v610_v51  ;;  %v389_v0 = vmul.f32 1.442695, %v365_v49  ;;  %v393_v59 = vmul.f32 1.442695, %v367_v52  ;;  %v397_v60 = vmul.f32 1.442695, %v369_v53 }
  0xb7   : > { %v2066_v2 = vpop.eup %1629  ;;  %v596_v4 = vadd.f32 %v595_v57, %v594_v48  ;;  %v417_v5 = vrot.slane %v416_v58, 4  ;;  %v401_v6 = vmul.f32 1.442695, %v371_v31  ;;  %v876_v8 = vsub.f32 %v1967_v34, %v1977_v38 }
  0xb8   : > { %v2070_v9 = vpop.eup %1631  ;;  %v612_v10 = vadd.f32 %v2060_v54, %v611_v63  ;;  %v432_v32 = vadd.f32 %v2066_v2, %v2063_v62  ;;  %1643 = vpow2.f32 %v389_v0  ;;  %v878_v12 = vsub.f32 %v1967_v34, %v2001_v56 }
  0xb9   : > { %v2077_v13 = vpop.eup %1633  ;;  %v597_v15 = vrot.slane %v596_v4, 2  ;;  %v418_v16 = vadd.f32 %v417_v5, %v416_v58  ;;  %1645 = vpow2.f32 %v393_v59  ;;  %v880_v17 = vsub.f32 %v1967_v34, %v1975_v37 }
  0xba   : > { %v613_v20 = vrot.slane %v612_v10, 4  ;;  %v433_v21 = vadd.f32 %v2070_v9, %v432_v32  ;;  %1647 = vpow2.f32 %v397_v60  ;;  %v882_v22 = vsub.f32 %v1967_v34, %v1999_v55 }
  0xbb   : > { %v598_v23 = vadd.f32 %v597_v15, %v596_v4  ;;  %v419_v26 = vrot.slane %v418_v16, 2  ;;  %1649 = vpow2.f32 %v401_v6  ;;  %v884_v27 = vmul.f32 %v876_v8, %v876_v8 }
  0xbc   : > { %v2084_v28 = vpop.eup %1635  ;;  %v614_v43 = vadd.f32 %v613_v20, %v612_v10  ;;  %v434_v45 = vadd.f32 %v2077_v13, %v433_v21  ;;  %v886_v30 = vmul.f32 %v878_v12, %v878_v12  ;;  %v888_v46 = vmul.f32 %v880_v17, %v880_v17 }
  0xbd   : > { %v2087_v48 = vpop.eup %1637  ;;  %v599_v33 = vrot.slane %v598_v23, 1  ;;  %v420_v49 = vadd.f32 %v419_v26, %v418_v16  ;;  %v890_v51 = vmul.f32 %v882_v22, %v882_v22  ;;  %v892_v52 = vmul.f32 -480.5, %v884_v27 }
  0xbe   : > { %v2089_v53 = vpop.eup %1639  ;;  %v615_v34 = vrot.slane %v614_v43, 2  ;;  %v435_v57 = vrot.slane %v434_v45, 4  ;;  %v601_v58 = vadd.f32 %v2087_v48, %v2084_v28  ;;  %v894_v31 = vmul.f32 -480.5, %v886_v30 }
  0xbf   : > { %v2093_v63 = vpop.eup %1641  ;;  %v600_v0 = vadd.f32 %v599_v33, %v598_v23  ;;  %v421_v59 = vrot.slane %v420_v49, 1  ;;  %v896_v60 = vmul.f32 -480.5, %v888_v46  ;;  %v898_v4 = vmul.f32 -480.5, %v890_v51 }
  0xc0   : > { %v616_v5 = vadd.f32 %v615_v34, %v614_v43  ;;  %v436_v6 = vadd.f32 %v435_v57, %v434_v45  ;;  %v602_v8 = vadd.f32 %v2089_v53, %v601_v58  ;;  %v917_v10 = vmul.f32 1.442695, %v892_v52 }
  0xc1   : > { %1651 = vrcp.f32 %v600_v0  ;;  %v422_v32 = vadd.f32 %v421_v59, %v420_v49  ;;  %v921_v12 = vmul.f32 1.442695, %v894_v31  ;;  %v925_v15 = vmul.f32 1.442695, %v896_v60 }
  0xc2   : > { %v2096_v16 = vpop.eup %1643  ;;  %v617_v17 = vrot.slane %v616_v5, 1  ;;  %v437_v20 = vrot.slane %v436_v6, 2  ;;  %v603_v21 = vadd.f32 %v2093_v63, %v602_v8  ;;  %1653 = vpow2.f32 %v917_v10 }
  0xc3   : > { %v2099_v22 = vpop.eup %1645  ;;  %1655 = vrcp.f32 %v422_v32  ;;  %v929_v23 = vmul.f32 1.442695, %v898_v4  ;;  %v1143_v26 = vsub.f32 %v1970_v35, %v1977_v38  ;;  %v1145_v27 = vsub.f32 %v1970_v35, %v2001_v56 }
  0xc4   : > { %v2105_v43 = vpop.eup %1647  ;;  %v618_v45 = vadd.f32 %v617_v17, %v616_v5  ;;  %v438_v30 = vadd.f32 %v437_v20, %v436_v6  ;;  %v604_v46 = vrot.slane %v603_v21, 4  ;;  %v423_v33 = vadd.f32 %v2099_v22, %v2096_v16 }
  0xc5   : > { %v2109_v49 = vpop.eup %1649  ;;  %1657 = vpow2.f32 %v921_v12  ;;  %v1147_v51 = vsub.f32 %v1970_v35, %v1975_v37  ;;  %v1149_v52 = vsub.f32 %v1970_v35, %v1999_v55  ;;  %v1151_v34 = vmul.f32 %v1143_v26, %v1143_v26 }
  0xc6   : > { %1659 = vrcp.f32 %v618_v45  ;;  %v439_v57 = vrot.slane %v438_v30, 1  ;;  %v605_v58 = vadd.f32 %v604_v46, %v603_v21  ;;  %v424_v31 = vadd.f32 %v2105_v43, %v423_v33 }
  0xc7   : > { %1661 = vpow2.f32 %v925_v15  ;;  %v1153_v59 = vmul.f32 %v1145_v27, %v1145_v27  ;;  %v1155_v60 = vmul.f32 %v1147_v51, %v1147_v51  ;;  %v1157_v4 = vmul.f32 %v1149_v52, %v1149_v52 }
  0xc8   : > { %v440_v5 = vadd.f32 %v439_v57, %v438_v30  ;;  %v606_v6 = vrot.slane %v605_v58, 2  ;;  %v425_v8 = vadd.f32 %v2109_v49, %v424_v31  ;;  %1663 = vpow2.f32 %v929_v23 }
  0xc9   : > { %v1159_v10 = vmul.f32 -480.5, %v1151_v34  ;;  %v1161_v12 = vmul.f32 -480.5, %v1153_v59  ;;  %v1163_v17 = vmul.f32 -480.5, %v1155_v60  ;;  %v1165_v20 = vmul.f32 -480.5, %v1157_v4 }
  0xca   : > { %1665 = vrcp.f32 %v440_v5  ;;  %v607_v35 = vadd.f32 %v606_v6, %v605_v58  ;;  %v426_v26 = vrot.slane %v425_v8, 4  ;;  %v492_v21 = vsub.f32 %v1973_v36, %v1977_v38 }
  0xcb   : > { %v1652_v46 = vpop.eup %1651  ;;  %v1184_v15 = vmul.f32 1.442695, %v1159_v10  ;;  %v1188_v27 = vmul.f32 1.442695, %v1161_v12  ;;  %v1192_v33 = vmul.f32 1.442695, %v1163_v17  ;;  %v494_v30 = vsub.f32 %v1973_v36, %v2001_v56 }
  0xcc   : > { %v2121_v51 = vpop.eup %1653  ;;  %v624_v23 = vmul.f32 %v1652_v46, %v600_v0  ;;  %v608_v52 = vrot.slane %v607_v35, 1  ;;  %v427_v34 = vadd.f32 %v426_v26, %v425_v8  ;;  %v1196_v57 = vmul.f32 1.442695, %v1165_v20 }
  0xcd   : > { %v1656_v31 = vpop.eup %1655  ;;  %1667 = vpow2.f32 %v1184_v15  ;;  %v496_v58 = vsub.f32 %v1973_v36, %v1975_v37  ;;  %v498_v59 = vsub.f32 %v1973_v36, %v1999_v55  ;;  %v500_v60 = vmul.f32 %v492_v21, %v492_v21 }
  0xce   : > { %v626_v4 = vsub.f32 2.0, %v624_v23  ;;  %v446_v6 = vmul.f32 %v1656_v31, %v422_v32  ;;  %v2127_v10 = vadd.f32 %v608_v52, %v607_v35  ;;  %v428_v12 = vrot.slane %v427_v34, 2 }
  0xcf   : > { %v2129_v17 = vpop.eup %1657  ;;  %1669 = vpow2.f32 %v1188_v27  ;;  %v502_v0 = vmul.f32 %v494_v30, %v494_v30  ;;  %v504_v8 = vmul.f32 %v496_v58, %v496_v58  ;;  %v506_v20 = vmul.f32 %v498_v59, %v498_v59 }
  0xd0   : > { %v1660_v26 = vpop.eup %1659  ;;  %v2131_v15 = vmul.f32 %v1652_v46, %v626_v4  ;;  %v448_v42 = vsub.f32 2.0, %v446_v6  ;;  %1671 = vrcp.f32 %v2127_v10  ;;  %v429_v25 = vadd.f32 %v428_v12, %v427_v34 }
  0xd1   : > { %v2134_v36 = vpop.eup %1661  ;;  %v630_v21 = vmul.f32 %v1660_v26, %v618_v45  ;;  %v958_v32 = vadd.f32 %v2129_v17, %v2121_v51  ;;  %1673 = vpow2.f32 %v1192_v33  ;;  %v508_v35 = vmul.f32 -480.5, %v500_v60 }
  0xd2   : > { %v2138_v23 = vpop.eup %1663  ;;  %v636_v27 = vmul.f32 %v2017_v61, %v2131_v15  ;;  %v2142_v30 = vmul.f32 %v1656_v31, %v448_v42  ;;  %v430_v46 = vrot.slane %v429_v25, 1  ;;  %1675 = vpow2.f32 %v1196_v57 }
  0xd3   : > { %v632_v52 = vsub.f32 2.0, %v630_v21  ;;  %v959_v34 = vadd.f32 %v2134_v36, %v958_v32  ;;  %v510_v58 = vmul.f32 -480.5, %v502_v0  ;;  %v512_v59 = vmul.f32 -480.5, %v504_v8 }
  0xd4   : > { %v1666_v45 = vpop.eup %1665  ;;  %715 = vmatprep.mubr.f32.mxu0 %v636_v27  ;;  %v458_v33 = vmul.f32 %v2025_v3, %v2142_v30  ;;  %v431_v60 = vadd.f32 %v430_v46, %v429_v25  ;;  %v514_v4 = vmul.f32 -480.5, %v506_v20  ;;  %v551_v6 = vmul.f32 1.442695, %v508_v35 }
  0xd5   : > { %v634_v12 = vmul.f32 %v1660_v26, %v632_v52  ;;  %v452_v7 = vmul.f32 %v1666_v45, %v440_v5  ;;  %v960_v42 = vadd.f32 %v2138_v23, %v959_v34  ;;  %v555_v61 = vmul.f32 1.442695, %v510_v58 }
  0xd6   : > { %800 = vmatprep.mubr.f32.mxu1 %v458_v33  ;;  %1677 = vrcp.f32 %v431_v60  ;;  %v559_v57 = vmul.f32 1.442695, %v512_v59  ;;  %v563_v31 = vmul.f32 1.442695, %v514_v4  ;;  %v2529_v0 = vmax.f32 %v1954_v29, 0.0 }
  0xd7   : > { %v2152_v21 = vpop.eup %1667  ;;  %v644_v3 = vmul.f32 %v2050_v44, %v634_v12  ;;  %v646_v25 = vmul.f32 %v2052_v47, %v634_v12  ;;  %v454_v20 = vsub.f32 2.0, %v452_v7  ;;  %v314_v5 = vsub.f32 %v1980_v39, %v1977_v38 }
  0xd8   : > { %v2150_v8 = vmin.f32 %v2529_v0, 1.0  ;;  %v2159_v26 = vmul.f32 %v2056_v50, %v634_v12  ;;  %v2162_v32 = vmul.f32 %v2060_v54, %v634_v12  ;;  %v961_v35 = vrot.slane %v960_v42, 4 }
  0xd9   : > { %1679 = vpow2.f32 %v551_v6  ;;  %v2164_v29 = vpop.eup %1669  ;;  %v1510_v27 = vpack.c.bf16 %v646_v25, %v644_v3  ;;  %v456_v46 = vmul.f32 %v1666_v45, %v454_v20  ;;  %v316_v44 = vsub.f32 %v1980_v39, %v2001_v56 }
  0xda   : > { %1681 = vpow2.f32 %v555_v61  ;;  %v1672_v7 = vpop.eup %1671  ;;  %v962_v47 = vadd.f32 %v961_v35, %v960_v42  ;;  %v1225_v52 = vadd.f32 %v2164_v29, %v2152_v21  ;;  %v318_v50 = vsub.f32 %v1980_v39, %v1975_v37 }
  0xdb   : > { %1683 = vpow2.f32 %v559_v57  ;;  %v2172_v54 = vpop.eup %1673  ;;  %1511 = vmatprep.subr.bf16.mxu0 %v1510_v27  ;;  %v466_v34 = vmul.f32 %v2063_v62, %v456_v46  ;;  %v468_v58 = vmul.f32 %v2066_v2, %v456_v46  ;;  %v629_v59 = vmul.f32 %v1672_v7, %v2127_v10 }
  0xdc   : > { %v2178_v45 = vmul.f32 %v2070_v9, %v456_v46  ;;  %v2180_v33 = vpop.eup %1675  ;;  %v2183_v4 = vmul.f32 %v2077_v13, %v456_v46  ;;  %v963_v6 = vrot.slane %v962_v47, 2  ;;  %v1226_v12 = vadd.f32 %v2172_v54, %v1225_v52 }
  0xdd   : > { %1685 = vpow2.f32 %v563_v31  ;;  %v1518_v42 = vpack.c.bf16 %v468_v58, %v466_v34  ;;  %v631_v61 = vsub.f32 2.0, %v629_v59  ;;  %v320_v62 = vsub.f32 %v1980_v39, %v1999_v55 }
  0xde   : > { %v322_v2 = vmul.f32 %v314_v5, %v314_v5  ;;  %v1514_v10 = vpack.c.bf16 %v2162_v32, %v2159_v26  ;;  %v964_v9 = vadd.f32 %v963_v6, %v962_v47  ;;  %v1227_v57 = vadd.f32 %v2180_v33, %v1226_v12 }
  0xdf   : > { %v324_v0 = vmul.f32 %v316_v44, %v316_v44  ;;  %1519 = vmatprep.subr.bf16.mxu1 %v1518_v42  ;;  %v633_v13 = vmul.f32 %v1672_v7, %v631_v61  ;;  %v326_v3 = vmul.f32 %v318_v50, %v318_v50  ;;  %v328_v25 = vmul.f32 %v320_v62, %v320_v62 }
  0xe0   : > { %v330_v20 = vmul.f32 -480.5, %v322_v2  ;;  %v1678_v35 = vpop.eup %1677  ;;  %v1522_v31 = vpack.c.bf16 %v2183_v4, %v2178_v45  ;;  %v965_v27 = vrot.slane %v964_v9, 1  ;;  %v1228_v46 = vrot.slane %v1227_v57, 4 }
  0xe1   : > { %v332_v39 = vmul.f32 -480.5, %v324_v0  ;;  %v643_v5 = vmul.f32 %v2084_v28, %v633_v13  ;;  %v645_v26 = vmul.f32 %v2087_v48, %v633_v13  ;;  %v451_v32 = vmul.f32 %v1678_v35, %v431_v60 }
  0xe2   : > { %v647_v47 = vmul.f32 %v2089_v53, %v633_v13  ;;  %v649_v7 = vmul.f32 %v2093_v63, %v633_v13  ;;  %v966_v52 = vadd.f32 %v965_v27, %v964_v9  ;;  %v1229_v50 = vadd.f32 %v1228_v46, %v1227_v57 }
  0xe3   : > { %v2196_v44 = vpop.eup %1679  ;;  %v334_v34 = vmul.f32 -480.5, %v326_v3  ;;  %v1512_v59 = vpack.c.bf16 %v645_v26, %v643_v5  ;;  %v453_v45 = vsub.f32 2.0, %v451_v32  ;;  %v336_v4 = vmul.f32 -480.5, %v328_v25 }
  0xe4   : > { %v2199_v58 = vpop.eup %1681  ;;  %v373_v6 = vmul.f32 1.442695, %v330_v20  ;;  %v1516_v28 = vpack.c.bf16 %v649_v7, %v647_v47  ;;  %1687 = vrcp.f32 %v966_v52  ;;  %v1230_v48 = vrot.slane %v1229_v50, 2 }
  0xe5   : > { %v2201_v12 = vpop.eup %1683  ;;  %v583_v53 = vadd.f32 %v2199_v58, %v2196_v44  ;;  %1513 = vmatpush1.bf16.xpose.msra.mxu0 %v1512_v59  ;;  %v455_v60 = vmul.f32 %v1678_v35, %v453_v45  ;;  %v377_v63 = vmul.f32 1.442695, %v332_v39  ;;  %v381_v42 = vmul.f32 1.442695, %v334_v34 }
  0xe6   : > { %1689 = vpow2.f32 %v373_v6  ;;  %1515 = vmatprep.subr.bf16.mxu0 %v1514_v10  ;;  %v1231_v62 = vadd.f32 %v1230_v48, %v1229_v50  ;;  %v385_v9 = vmul.f32 1.442695, %v336_v4  ;;  %v2210_v57 = vmul.f32 %v2041_v18, %v2142_v30 }
  0xe7   : > { %v2205_v61 = vpop.eup %1685  ;;  %v584_v2 = vadd.f32 %v2201_v12, %v583_v53  ;;  %v465_v0 = vmul.f32 %v2096_v16, %v455_v60  ;;  %v467_v13 = vmul.f32 %v2099_v22, %v455_v60  ;;  %v469_v3 = vmul.f32 %v2105_v43, %v455_v60 }
  0xe8   : > { %v471_v25 = vmul.f32 %v2109_v49, %v455_v60  ;;  %v1232_v20 = vrot.slane %v1231_v62, 1  ;;  %1691 = vpow2.f32 %v377_v63  ;;  %v875_v10 = vsub.f32 %v1983_v40, %v1977_v38 }
  0xe9   : > { %v585_v35 = vadd.f32 %v2205_v61, %v584_v2  ;;  %v1520_v27 = vpack.c.bf16 %v467_v13, %v465_v0  ;;  %1693 = vpow2.f32 %v381_v42  ;;  %v877_v18 = vsub.f32 %v1983_v40, %v2001_v56 }
  0xea   : > { %v1524_v46 = vpack.c.bf16 %v471_v25, %v469_v3  ;;  %v2221_v16 = vadd.f32 %v1232_v20, %v1231_v62  ;;  %1695 = vpow2.f32 %v385_v9  ;;  %v879_v43 = vsub.f32 %v1983_v40, %v1975_v37 }
  0xeb   : > { %v586_v22 = vrot.slane %v585_v35, 4  ;;  %1521 = vmatpush1.bf16.xpose.msra.mxu1 %v1520_v27  ;;  %v881_v49 = vsub.f32 %v1983_v40, %v1999_v55  ;;  %v883_v39 = vmul.f32 %v875_v10, %v875_v10  ;;  %v885_v5 = vmul.f32 %v877_v18, %v877_v18 }
  0xec   : > { %v1142_v26 = vsub.f32 %v1986_v41, %v1977_v38  ;;  %1523 = vmatprep.subr.bf16.mxu1 %v1522_v31  ;;  %1697 = vrcp.f32 %v2221_v16  ;;  %v887_v47 = vmul.f32 %v879_v43, %v879_v43  ;;  %v1144_v7 = vsub.f32 %v1986_v41, %v2001_v56 }
  0xed   : > { %v587_v32 = vadd.f32 %v586_v22, %v585_v35  ;;  %1517 = vmatpush1.bf16.xpose.msra.mxu0 %v1516_v28  ;;  %v889_v50 = vmul.f32 %v881_v49, %v881_v49  ;;  %v891_v34 = vmul.f32 -480.5, %v883_v39  ;;  %v893_v59 = vmul.f32 -480.5, %v885_v5 }
  0xee   : > { %v1146_v40 = vsub.f32 %v1986_v41, %v1975_v37  ;;  %v1688_v45 = vpop.eup %1687  ;;  %v895_v6 = vmul.f32 -480.5, %v887_v47  ;;  %v1148_v31 = vsub.f32 %v1986_v41, %v1999_v55  ;;  %v1150_v48 = vmul.f32 %v1142_v26, %v1142_v26 }
  0xef   : > { %v588_v4 = vrot.slane %v587_v32, 2  ;;  %v978_v60 = vmul.f32 %v1688_v45, %v966_v52  ;;  %v897_v63 = vmul.f32 -480.5, %v889_v50  ;;  %v915_v42 = vmul.f32 1.442695, %v891_v34 }
  0xf0   : > { %v2236_v53 = vpop.eup %1689  ;;  %v919_v62 = vmul.f32 1.442695, %v893_v59  ;;  %v923_v2 = vmul.f32 1.442695, %v895_v6  ;;  %v1152_v9 = vmul.f32 %v1144_v7, %v1144_v7  ;;  %v1154_v0 = vmul.f32 %v1146_v40, %v1146_v40 }
  0xf1   : > { %v589_v28 = vadd.f32 %v588_v4, %v587_v32  ;;  %v980_v13 = vsub.f32 2.0, %v978_v60  ;;  %1699 = vpow2.f32 %v915_v42  ;;  %v927_v3 = vmul.f32 1.442695, %v897_v63 }
  0xf2   : > { %v1156_v25 = vmul.f32 %v1148_v31, %v1148_v31  ;;  %v2238_v20 = vpop.eup %1691  ;;  %1701 = vpow2.f32 %v919_v62  ;;  %v1158_v41 = vmul.f32 -480.5, %v1150_v48  ;;  %v1160_v10 = vmul.f32 -480.5, %v1152_v9  ;;  %v1502_v48 = vld [vmem:[%s1940_s11 + $0x6] sm:$0x3] }
  0xf3   : > { %v590_v35 = vrot.slane %v589_v28, 1  ;;  %v2240_v27 = vpop.eup %1693  ;;  %1525 = vmatpush1.bf16.xpose.msra.mxu1 %v1524_v46  ;;  %v982_v52 = vmul.f32 %v1688_v45, %v980_v13  ;;  %v405_v18 = vadd.f32 %v2238_v20, %v2236_v53  ;;  %1703 = vpow2.f32 %v923_v2 }
  0xf4   : > { %v1162_v22 = vmul.f32 -480.5, %v1154_v0  ;;  %v2244_v43 = vpop.eup %1695  ;;  %1705 = vpow2.f32 %v927_v3  ;;  %v1164_v39 = vmul.f32 -480.5, %v1156_v25  ;;  %v1182_v5 = vmul.f32 1.442695, %v1158_v41 }
  0xf5   : > { %v591_v49 = vadd.f32 %v590_v35, %v589_v28  ;;  %v992_v26 = vmul.f32 %v2121_v51, %v982_v52  ;;  %v994_v32 = vmul.f32 %v2129_v17, %v982_v52  ;;  %v406_v47 = vadd.f32 %v2240_v27, %v405_v18 }
  0xf6   : > { %v1186_v7 = vmul.f32 1.442695, %v1160_v10  ;;  %v1698_v46 = vpop.eup %1697  ;;  %v1190_v50 = vmul.f32 1.442695, %v1162_v22  ;;  %v2250_v34 = vmul.f32 %v2134_v36, %v982_v52  ;;  %v837_v59 = vrot.slane %v2150_v8, %v1947_v19 }
  0xf7   : > { %1707 = vrcp.f32 %v591_v49  ;;  %v1526_v40 = vpack.c.bf16 %v994_v32, %v992_v26  ;;  %v1245_v45 = vmul.f32 %v1698_v46, %v2221_v16  ;;  %v407_v51 = vadd.f32 %v2244_v43, %v406_v47 }
  0xf8   : > { %1709 = vpow2.f32 %v1182_v5  ;;  %v1194_v17 = vmul.f32 1.442695, %v1164_v39  ;;  %v2257_v4 = vmul.f32 %v2138_v23, %v982_v52  ;;  %v841_v60 = vsub.f32 %v837_v59, %v1977_v38 }
  0xf9   : > { %1711 = vpow2.f32 %v1186_v7  ;;  %1527 = vmatprep.subr.bf16.mxu0 %v1526_v40  ;;  %v1247_v6 = vsub.f32 2.0, %v1245_v45  ;;  %v408_v31 = vrot.slane %v407_v51, 4  ;;  %v843_v62 = vsub.f32 %v837_v59, %v2001_v56 }
  0xfa   : > { %1713 = vpow2.f32 %v1190_v50  ;;  %v1530_v36 = vpack.c.bf16 %v2257_v4, %v2250_v34  ;;  %v2270_v23 = vrot.slane %v2150_v8, %v1949_v24  ;;  %v845_v2 = vsub.f32 %v837_v59, %v1975_v37 }
  0xfb   : > { %v2263_v63 = vpop.eup %1699  ;;  %v1249_v16 = vmul.f32 %v1698_v46, %v1247_v6  ;;  %v409_v42 = vadd.f32 %v408_v31, %v407_v51  ;;  %1715 = vpow2.f32 %v1194_v17  ;;  %v1090_v9 = vmax.f32 %v1502_v48, 0.0 }
  0xfc   : > { %v2266_v28 = vpop.eup %1701  ;;  %v847_v52 = vsub.f32 %v837_v59, %v1999_v55  ;;  %v849_v18 = vmul.f32 %v841_v60, %v841_v60  ;;  %v842_v32 = vsub.f32 %v2270_v23, %v2001_v56 }
  0xfd   : > { %v2273_v0 = vpop.eup %1703  ;;  %v1259_v13 = vmul.f32 %v2152_v21, %v1249_v16  ;;  %v1261_v3 = vmul.f32 %v2164_v29, %v1249_v16  ;;  %v410_v25 = vrot.slane %v409_v42, 2  ;;  %v949_v35 = vadd.f32 %v2266_v28, %v2263_v63 }
  0xfe   : > { %v2279_v41 = vpop.eup %1705  ;;  %v2282_v10 = vmul.f32 %v2172_v54, %v1249_v16  ;;  %v2285_v8 = vmul.f32 %v2180_v33, %v1249_v16  ;;  %v851_v29 = vmul.f32 %v843_v62, %v843_v62  ;;  %v853_v54 = vmul.f32 %v845_v2, %v845_v2 }
  0xff   : > { %v1534_v22 = vpack.c.bf16 %v1261_v3, %v1259_v13  ;;  %v411_v39 = vadd.f32 %v410_v25, %v409_v42  ;;  %v950_v21 = vadd.f32 %v2273_v0, %v949_v35  ;;  %v855_v59 = vmul.f32 %v847_v52, %v847_v52 }
 0x100   : > { %v1538_v26 = vpack.c.bf16 %v2285_v8, %v2282_v10  ;;  %v857_v40 = vmul.f32 -480.5, %v849_v18  ;;  %v859_v45 = vmul.f32 -480.5, %v851_v29  ;;  %v1091_v51 = vmin.f32 %v1090_v9, 1.0 }
 0x101   : > { %v1708_v5 = vpop.eup %1707  ;;  %1535 = vmatprep.subr.bf16.mxu1 %v1534_v22  ;;  %v412_v7 = vrot.slane %v411_v39, 1  ;;  %v951_v46 = vadd.f32 %v2279_v41, %v950_v21  ;;  %v850_v16 = vmul.f32 %v842_v32, %v842_v32  ;;  %v861_v42 = vmul.f32 -480.5, %v853_v54 }
 0x102   : > { %v2293_v47 = vpop.eup %1709  ;;  %v623_v33 = vmul.f32 %v1708_v5, %v591_v49  ;;  %v901_v49 = vmul.f32 1.442695, %v857_v40  ;;  %v863_v9 = vmul.f32 -480.5, %v855_v59  ;;  %v905_v25 = vmul.f32 1.442695, %v859_v45 }
 0x103   : > { %v2296_v50 = vpop.eup %1711  ;;  %v413_v6 = vadd.f32 %v412_v7, %v411_v39  ;;  %v952_v31 = vrot.slane %v951_v46, 4  ;;  %v2308_v35 = vrot.slane %v1091_v51, %v1949_v24  ;;  %v1104_v52 = vrot.slane %v1091_v51, %v1947_v19 }
 0x104   : > { %v625_v17 = vsub.f32 2.0, %v623_v33  ;;  %v1216_v48 = vadd.f32 %v2296_v50, %v2293_v47  ;;  %v2300_v60 = vpop.eup %1713  ;;  %v638_v22 = vmul.f32 %v2033_v11, %v2131_v15  ;;  %v640_v29 = vmul.f32 %v2021_v1, %v2131_v15 }
 0x105   : > { %1717 = vrcp.f32 %v413_v6  ;;  %v953_v2 = vadd.f32 %v952_v31, %v951_v46  ;;  %v2305_v3 = vpop.eup %1715  ;;  %v909_v24 = vmul.f32 1.442695, %v861_v42  ;;  %v858_v54 = vmul.f32 -480.5, %v850_v16 }
 0x106   : > { %v2302_v62 = vmul.f32 %v1708_v5, %v625_v17  ;;  %v1217_v13 = vadd.f32 %v2300_v60, %v1216_v48  ;;  %v844_v5 = vsub.f32 %v2270_v23, %v1975_v37  ;;  %1719 = vpow2.f32 %v901_v49 }
 0x107   : > { %v954_v39 = vrot.slane %v953_v2, 2  ;;  %1721 = vpow2.f32 %v905_v25  ;;  %v642_v11 = vmul.f32 %v2035_v14, %v2131_v15  ;;  %v1108_v33 = vsub.f32 %v1104_v52, %v1977_v38 }
 0x108   : > { %v635_v18 = vmul.f32 %v2196_v44, %v2302_v62  ;;  %v1218_v21 = vadd.f32 %v2305_v3, %v1217_v13  ;;  %v913_v44 = vmul.f32 1.442695, %v863_v9  ;;  %v1109_v1 = vsub.f32 %v2308_v35, %v2001_v56 }
 0x109   : > { %v955_v32 = vadd.f32 %v954_v39, %v953_v2  ;;  %v637_v59 = vmul.f32 %v2199_v58, %v2302_v62  ;;  %v1110_v40 = vsub.f32 %v1104_v52, %v2001_v56  ;;  %v846_v45 = vsub.f32 %v2270_v23, %v1999_v55 }
 0x10a   : > { %716 = vmatmul.mubr.f32.vlgmr.msra.gmra.mrb[0].mxu0 %v635_v18  ;;  %v1219_v19 = vrot.slane %v1218_v21, 4  ;;  %v852_v51 = vmul.f32 %v844_v5, %v844_v5  ;;  %1723 = vpow2.f32 %v909_v24  ;;  %v1112_v14 = vsub.f32 %v1104_v52, %v1975_v37 }
 0x10b   : > { %720 = vmatprep.mubr.f32.mxu0 %v638_v22  ;;  %v956_v7 = vrot.slane %v955_v32, 1  ;;  %v903_v31 = vmul.f32 1.442695, %v858_v54  ;;  %v1114_v48 = vsub.f32 %v1104_v52, %v1999_v55  ;;  %1725 = vpow2.f32 %v913_v44 }
 0x10c   : > { %v1220_v46 = vadd.f32 %v1219_v19, %v1218_v21  ;;  %v1116_v16 = vmul.f32 %v1108_v33, %v1108_v33  ;;  %v1117_v58 = vmul.f32 %v1109_v1, %v1109_v1  ;;  %v1118_v42 = vmul.f32 %v1110_v40, %v1110_v40 }
 0x10d   : > { %v2331_v15 = vadd.f32 %v956_v7, %v955_v32  ;;  %v639_v2 = vmul.f32 %v2201_v12, %v2302_v62  ;;  %v1120_v13 = vmul.f32 %v1112_v14, %v1112_v14  ;;  %v854_v25 = vmul.f32 %v846_v45, %v846_v45 }
 0x10e   : > { %v1221_v17 = vrot.slane %v1220_v46, 2  ;;  %721 = vmatmul.mubr.f32.gmra.mrb[2].mxu0 %v637_v59  ;;  %v1122_v18 = vmul.f32 %v1114_v48, %v1114_v48  ;;  %v1124_v22 = vmul.f32 -480.5, %v1116_v16  ;;  %v860_v52 = vmul.f32 -480.5, %v852_v51 }
 0x10f   : > { %725 = vmatprep.mubr.f32.mxu0 %v640_v29  ;;  %v1718_v56 = vpop.eup %1717  ;;  %1727 = vrcp.f32 %v2331_v15  ;;  %v1111_v21 = vsub.f32 %v2308_v35, %v1975_v37  ;;  %v1126_v29 = vmul.f32 -480.5, %v1118_v42  ;;  %v1113_v32 = vsub.f32 %v2308_v35, %v1999_v55  ;;  %v2530_v55 = vld [vmem:[#allocation5_spill] sm:$0xff] }
 0x110   : > { %v1222_v49 = vadd.f32 %v1221_v17, %v1220_v46  ;;  %v445_v9 = vmul.f32 %v1718_v56, %v413_v6  ;;  %v2339_v5 = vpop.eup %1719  ;;  %v1125_v12 = vmul.f32 -480.5, %v1117_v58  ;;  %v1128_v19 = vmul.f32 -480.5, %v1120_v13 }
 0x111   : > { %v2343_v6 = vpop.eup %1721  ;;  %v641_v44 = vmul.f32 %v2205_v61, %v2302_v62  ;;  %1729 = vpow2.f32 %v903_v31  ;;  %v1168_v33 = vmul.f32 1.442695, %v1124_v22  ;;  %v1130_v7 = vmul.f32 -480.5, %v1122_v18 }
 0x112   : > { %v1223_v39 = vrot.slane %v1222_v49, 1  ;;  %726 = vmatmul.mubr.f32.gmra.mrb[4].mxu0 %v639_v2  ;;  %v447_v24 = vsub.f32 2.0, %v445_v9  ;;  %v940_v37 = vadd.f32 %v2343_v6, %v2339_v5  ;;  %v462_v46 = vmul.f32 %v2530_v55, %v2142_v30 }
 0x113   : > { %730 = vmatprep.mubr.f32.mxu0 %v642_v11  ;;  %v1172_v11 = vmul.f32 1.442695, %v1126_v29  ;;  %v1119_v59 = vmul.f32 %v1111_v21, %v1111_v21  ;;  %v840_v40 = vsub.f32 %v2270_v23, %v1977_v38  ;;  %v1121_v62 = vmul.f32 %v1113_v32, %v1113_v32 }
 0x114   : > { %v1224_v54 = vadd.f32 %v1223_v39, %v1222_v49  ;;  %v2347_v1 = vmul.f32 %v1718_v56, %v447_v24  ;;  %v2355_v45 = vpop.eup %1723  ;;  %v1170_v51 = vmul.f32 1.442695, %v1125_v12  ;;  %v1176_v14 = vmul.f32 1.442695, %v1128_v19  ;;  %v2531_v12 = vld [vmem:[#allocation6_spill] sm:$0xff] }
 0x115   : > { %v941_v17 = vadd.f32 %v2355_v45, %v940_v37  ;;  %v848_v31 = vmul.f32 %v840_v40, %v840_v40  ;;  %v1107_v48 = vsub.f32 %v2308_v35, %v1977_v38  ;;  %v2362_v16 = vpop.eup %1725  ;;  %v862_v58 = vmul.f32 -480.5, %v854_v25 }
 0x116   : > { %1731 = vrcp.f32 %v1224_v54  ;;  %731 = vmatmul.mubr.f32.gmra.mrb[6].mxu0 %v641_v44  ;;  %v457_v61 = vmul.f32 %v2236_v53, %v2347_v1  ;;  %v907_v23 = vmul.f32 1.442695, %v860_v52  ;;  %v1180_v42 = vmul.f32 1.442695, %v1130_v7 }
 0x117   : > { %1733 = vpow2.f32 %v1168_v33  ;;  %v942_v53 = vadd.f32 %v2362_v16, %v941_v17  ;;  %v1127_v49 = vmul.f32 -480.5, %v1119_v59  ;;  %v856_v2 = vmul.f32 -480.5, %v848_v31 }
 0x118   : > { %801 = vmatmul.mubr.f32.vlgmr.msra.gmra.mrb[0].mxu1 %v457_v61  ;;  %1735 = vpow2.f32 %v1172_v11  ;;  %v1115_v13 = vmul.f32 %v1107_v48, %v1107_v48  ;;  %v459_v38 = vmul.f32 %v2238_v20, %v2347_v1  ;;  %v1129_v35 = vmul.f32 -480.5, %v1121_v62 }
 0x119   : > { %v1728_v56 = vpop.eup %1727  ;;  %805 = vmatprep.mubr.f32.mxu1 %v2210_v57  ;;  %1737 = vpow2.f32 %v1176_v14  ;;  %v943_v18 = vrot.slane %v942_v53, 4  ;;  %v899_v25 = vmul.f32 1.442695, %v856_v2  ;;  %v911_v52 = vmul.f32 1.442695, %v862_v58 }
 0x11a   : > { %v977_v9 = vmul.f32 %v1728_v56, %v2331_v15  ;;  %1739 = vpow2.f32 %v1170_v51  ;;  %v1123_v22 = vmul.f32 -480.5, %v1115_v13  ;;  %v1174_v29 = vmul.f32 1.442695, %v1127_v49 }
 0x11b   : > { %1741 = vpow2.f32 %v1180_v42  ;;  %v2369_v57 = vpop.eup %1729  ;;  %v944_v21 = vadd.f32 %v943_v18, %v942_v53  ;;  %v461_v20 = vmul.f32 %v2240_v27, %v2347_v1  ;;  %v464_v19 = vmul.f32 %v2531_v12, %v2142_v30 }
 0x11c   : > { %v979_v39 = vsub.f32 2.0, %v977_v9  ;;  %806 = vmatmul.mubr.f32.gmra.mrb[2].mxu1 %v459_v38  ;;  %1743 = vpow2.f32 %v899_v25  ;;  %v1166_v15 = vmul.f32 1.442695, %v1123_v22  ;;  %v1178_v33 = vmul.f32 1.442695, %v1129_v35 }
 0x11d   : > { %810 = vmatprep.mubr.f32.mxu1 %v462_v46  ;;  %1745 = vpow2.f32 %v907_v23  ;;  %v945_v44 = vrot.slane %v944_v21, 2  ;;  %v463_v30 = vmul.f32 %v2244_v43, %v2347_v1 }
 0x11e   : > { %v981_v24 = vmul.f32 %v1728_v56, %v979_v39  ;;  %1747 = vpow2.f32 %v1166_v15 }
 0x11f   : > { %1749 = vpow2.f32 %v911_v52  ;;  %v946_v46 = vadd.f32 %v945_v44, %v944_v21 }
 0x120   : > { %v1732_v32 = vpop.eup %1731  ;;  %v991_v37 = vmul.f32 %v2263_v63, %v981_v24  ;;  %v993_v7 = vmul.f32 %v2266_v28, %v981_v24  ;;  %811 = vmatmul.mubr.f32.gmra.mrb[4].mxu1 %v461_v20  ;;  %1751 = vpow2.f32 %v1174_v29  ;;  %v995_v31 = vmul.f32 %v2273_v0, %v981_v24 }
 0x121   : > { %v1244_v11 = vmul.f32 %v1732_v32, %v1224_v54  ;;  %v2377_v55 = vpop.eup %1733  ;;  %815 = vmatprep.mubr.f32.mxu1 %v464_v19  ;;  %v947_v61 = vrot.slane %v946_v46, 1  ;;  %1753 = vpow2.f32 %v1178_v33  ;;  %v997_v48 = vmul.f32 %v2279_v41, %v981_v24 }
 0x122   : > { %v2379_v27 = vpop.eup %1735  ;;  %v1528_v59 = vpack.c.bf16 %v993_v7, %v991_v37 }
 0x123   : > { %v1246_v40 = vsub.f32 2.0, %v1244_v11  ;;  %v1207_v63 = vadd.f32 %v2379_v27, %v2377_v55  ;;  %v2385_v28 = vpop.eup %1737  ;;  %v948_v51 = vadd.f32 %v947_v61, %v946_v46 }
 0x124   : > { %1529 = vmatpush1.bf16.xpose.msra.mxu0 %v1528_v59  ;;  %816 = vmatmul.mubr.f32.gmra.mrb[6].mxu1 %v463_v30  ;;  %v2387_v62 = vpop.eup %1739 }
 0x125   : > { %v1248_v54 = vmul.f32 %v1732_v32, %v1246_v40  ;;  %1531 = vmatprep.subr.bf16.mxu0 %v1530_v36  ;;  %v1208_v14 = vadd.f32 %v2385_v28, %v1207_v63  ;;  %v2393_v43 = vpop.eup %1741  ;;  %1755 = vrcp.f32 %v948_v51 }
 0x126   : > { %v2399_v58 = vpop.eup %1743 }
 0x127   : > { %v1258_v1 = vmul.f32 %v2293_v47, %v1248_v54  ;;  %v1260_v17 = vmul.f32 %v2296_v50, %v1248_v54  ;;  %v1209_v23 = vadd.f32 %v2393_v43, %v1208_v14  ;;  %v2402_v34 = vpop.eup %1745  ;;  %v931_v36 = vadd.f32 %v2399_v58, %v2369_v57 }
 0x128   : > { %v1748_v42 = vpop.eup %1747  ;;  %v1532_v50 = vpack.c.bf16 %v997_v48, %v995_v31  ;;  %v1262_v2 = vmul.f32 %v2300_v60, %v1248_v54  ;;  %v1264_v13 = vmul.f32 %v2305_v3, %v1248_v54 }
 0x129   : > { %v1536_v4 = vpack.c.bf16 %v1260_v17, %v1258_v1  ;;  %v1210_v56 = vrot.slane %v1209_v23, 4  ;;  %v2406_v47 = vpop.eup %1749  ;;  %v932_v0 = vadd.f32 %v2402_v34, %v931_v36  ;;  %v1198_v41 = vadd.f32 %v1748_v42, %v2387_v62 }
 0x12a   : > { %v2410_v53 = vpop.eup %1751  ;;  %v1540_v52 = vpack.c.bf16 %v1264_v13, %v1262_v2 }
 0x12b   : > { %1537 = vmatpush1.bf16.xpose.msra.mxu1 %v1536_v4  ;;  %v1211_v49 = vadd.f32 %v1210_v56, %v1209_v23  ;;  %v933_v9 = vadd.f32 %v2406_v47, %v932_v0  ;;  %v1199_v38 = vadd.f32 %v2410_v53, %v1198_v41  ;;  %v2419_v35 = vpop.eup %1753 }
 0x12c   : > { %1539 = vmatprep.subr.bf16.mxu1 %v1538_v26  ;;  %1533 = vmatpush1.bf16.xpose.msra.mxu0 %v1532_v50 }
 0x12d   : > { %v1212_v18 = vrot.slane %v1211_v49, 2  ;;  %v934_v25 = vrot.slane %v933_v9, 4  ;;  %v1200_v22 = vadd.f32 %v2419_v35, %v1199_v38 }
 0x12f   : > { %v1213_v39 = vadd.f32 %v1212_v18, %v1211_v49  ;;  %v935_v10 = vadd.f32 %v934_v25, %v933_v9  ;;  %v1201_v8 = vrot.slane %v1200_v22, 4  ;;  %v1756_v26 = vpop.eup %1755 }
 0x130   : > { %v972_v60 = vmul.f32 %v1756_v26, %v948_v51 }
 0x131   : > { %v1214_v21 = vrot.slane %v1213_v39, 1  ;;  %v936_v29 = vrot.slane %v935_v10, 2  ;;  %v1202_v3 = vadd.f32 %v1201_v8, %v1200_v22 }
 0x132   : > { %v974_v24 = vsub.f32 2.0, %v972_v60 }
 0x133   : > { %1541 = vmatpush1.bf16.xpose.msra.mxu1 %v1540_v52  ;;  %v1215_v15 = vadd.f32 %v1214_v21, %v1213_v39  ;;  %v937_v20 = vadd.f32 %v936_v29, %v935_v10  ;;  %v1203_v32 = vrot.slane %v1202_v3, 2 }
 0x134   : > { %v976_v12 = vmul.f32 %v1756_v26, %v974_v24 }
 0x135   : > { %1757 = vrcp.f32 %v1215_v15  ;;  %v938_v19 = vrot.slane %v937_v20, 1  ;;  %v1204_v44 = vadd.f32 %v1203_v32, %v1202_v3 }
 0x136   : > { %v984_v33 = vmul.f32 %v2339_v5, %v976_v12  ;;  %v986_v23 = vmul.f32 %v2343_v6, %v976_v12 }
 0x137   : > { %v939_v37 = vadd.f32 %v938_v19, %v937_v20  ;;  %v1205_v7 = vrot.slane %v1204_v44, 1 }
 0x138   : > { %1063 = vmatprep.mubr.f32.mxu0 %v984_v33 }
 0x139   : > { %1759 = vrcp.f32 %v939_v37  ;;  %v1206_v11 = vadd.f32 %v1205_v7, %v1204_v44 }
 0x13b   : > { %1761 = vrcp.f32 %v1206_v11 }
 0x13f   : > { %v1758_v46 = vpop.eup %1757 }
 0x140   : > { %v1239_v59 = vmul.f32 %v1758_v46, %v1215_v15 }
 0x142   : > { %v1241_v40 = vsub.f32 2.0, %v1239_v59 }
 0x143   : > { %v1760_v30 = vpop.eup %1759 }
 0x144   : > { %v1243_v61 = vmul.f32 %v1758_v46, %v1241_v40  ;;  %v971_v63 = vmul.f32 %v1760_v30, %v939_v37 }
 0x145   : > { %v1762_v54 = vpop.eup %1761 }
 0x146   : > { %v1251_v51 = vmul.f32 %v2377_v55, %v1243_v61  ;;  %v973_v14 = vsub.f32 2.0, %v971_v63  ;;  %v1238_v1 = vmul.f32 %v1762_v54, %v1206_v11  ;;  %v1253_v36 = vmul.f32 %v2379_v27, %v1243_v61 }
 0x147   : > { %v988_v55 = vmul.f32 %v2355_v45, %v976_v12  ;;  %v990_v27 = vmul.f32 %v2362_v16, %v976_v12  ;;  %v1257_v45 = vmul.f32 %v2393_v43, %v1243_v61  ;;  %v1844_v16 = vmov 0.0  }
 0x148   : > { %1330 = vmatprep.mubr.f32.mxu1 %v1251_v51  ;;  %v975_v17 = vmul.f32 %v1760_v30, %v973_v14  ;;  %v1240_v5 = vsub.f32 2.0, %v1238_v1  ;;  %269 = vst.msk [vmem:[%s2440_s27] sm:$0xff] %vm268_vm0, %v1844_v16  ;;  %270 = vst.msk [vmem:[%s2440_s27 + $0x8] sm:$0xff] %vm268_vm0, %v1844_v16 }
 0x149   : > { %271 = vst.msk [vmem:[%s2440_s27 + $0x10] sm:$0xff] %vm268_vm0, %v1844_v16  ;;  %272 = vst.msk [vmem:[%s2440_s27 + $0x18] sm:$0xff] %vm268_vm0, %v1844_v16 }
 0x14a   : > { %v983_v31 = vmul.f32 %v2399_v58, %v975_v17  ;;  %v1242_v48 = vmul.f32 %v1762_v54, %v1240_v5  ;;  %v985_v56 = vmul.f32 %v2369_v57, %v975_v17  ;;  %v1255_v58 = vmul.f32 %v2385_v28, %v1243_v61 }
 0x14b   : > { %v987_v6 = vmul.f32 %v2402_v34, %v975_v17 }
 0x14c   : > { %1064 = vmatmul.mubr.f32.vlgmr.msra.gmra.mrb[8].mxu0 %v983_v31  ;;  %v1250_v4 = vmul.f32 %v1748_v42, %v1242_v48  ;;  %v1252_v50 = vmul.f32 %v2387_v62, %v1242_v48  ;;  %v1254_v57 = vmul.f32 %v2410_v53, %v1242_v48  ;;  %v989_v62 = vmul.f32 %v2406_v47, %v975_v17 }
 0x14d   : > { %1068 = vmatprep.mubr.f32.mxu0 %v986_v23  ;;  %v1256_v28 = vmul.f32 %v2419_v35, %v1242_v48 }
 0x14e   : > { %1331 = vmatmul.mubr.f32.vlgmr.msra.gmra.mrb[8].mxu1 %v1250_v4 }
 0x14f   : > { %1335 = vmatprep.mubr.f32.mxu1 %v1253_v36  ;;  %v1355_v3 = vld [vmem:[%s2440_s27] sm:$0xff]  ;;  %v1356_v33 = vld [vmem:[%s2440_s27 + $0x8] sm:$0xff] }
 0x150   : > { %1069 = vmatmul.mubr.f32.gmra.mrb[10].mxu0 %v985_v56  ;;  %v1357_v61 = vld [vmem:[%s2440_s27 + $0x10] sm:$0xff]  ;;  %v1358_v31 = vld [vmem:[%s2440_s27 + $0x18] sm:$0xff] }
 0x151   : > { %1073 = vmatprep.mubr.f32.mxu0 %v988_v55 }
 0x152   : > { %1336 = vmatmul.mubr.f32.gmra.mrb[10].mxu1 %v1252_v50 }
 0x153   : > { %1340 = vmatprep.mubr.f32.mxu1 %v1255_v58 }
 0x154   : > { %1074 = vmatmul.mubr.f32.gmra.mrb[12].mxu0 %v987_v6 }
 0x155   : > { %1078 = vmatprep.mubr.f32.mxu0 %v990_v27 }
 0x156   : > { %1341 = vmatmul.mubr.f32.gmra.mrb[12].mxu1 %v1254_v57 }
 0x157   : > { %1345 = vmatprep.mubr.f32.mxu1 %v1257_v45 }
 0x158   : > { %1079 = vmatmul.mubr.f32.gmra.mrb[14].mxu0 %v989_v62 }
 0x15a   : > { %1346 = vmatmul.mubr.f32.gmra.mrb[14].mxu1 %v1256_v28 }
 0x1dd   : > { %v717_v43 = vpop.f32.mrb[0].mxu0 }
 0x1de   : > { %v719_v34 = vpop.f32.mrb[1].mxu0 }
 0x1e1   : > { %v722_v42 = vpop.f32.mrb[2].mxu0 }
 0x1e2   : > { %v724_v47 = vpop.f32.mrb[3].mxu0 }
 0x1e5   : > { %v727_v0 = vpop.f32.mrb[4].mxu0 }
 0x1e6   : > { %v729_v41 = vpop.f32.mrb[5].mxu0 }
 0x1e9   : > { %v732_v53 = vpop.f32.mrb[6].mxu0 }
 0x1ea   : > { %v734_v49 = vpop.f32.mrb[7].mxu0 }
 0x1eb   : > { %v802_v2 = vpop.f32.mrb[0].mxu1 }
 0x1ec   : > { %v803_v13 = vadd.f32 %v802_v2, %v717_v43  ;;  %v804_v9 = vpop.f32.mrb[1].mxu1 }
 0x1ef   : > { %v807_v38 = vpop.f32.mrb[2].mxu1 }
 0x1f0   : > { %v808_v35 = vadd.f32 %v807_v38, %v722_v42  ;;  %v809_v18 = vpop.f32.mrb[3].mxu1 }
 0x1f3   : > { %v812_v25 = vpop.f32.mrb[4].mxu1 }
 0x1f4   : > { %v813_v22 = vadd.f32 %v812_v25, %v727_v0  ;;  %v814_v39 = vpop.f32.mrb[5].mxu1 }
 0x1f7   : > { %v817_v52 = vpop.f32.mrb[6].mxu1 }
 0x1f8   : > { %v818_v10 = vadd.f32 %v817_v52, %v732_v53  ;;  %v819_v8 = vpop.f32.mrb[7].mxu1 }
 0x21f   : > { %v1065_v26 = vpop.f32.mrb[8].mxu0 }
 0x220   : > { %v1084_v21 = vadd.f32 %v1065_v26, %v803_v13  ;;  %v1067_v60 = vpop.f32.mrb[9].mxu0 }
 0x221   : > { %v1332_v29 = vpop.f32.mrb[8].mxu1 }
 0x222   : > { %v1351_v15 = vadd.f32 %v1332_v29, %v1084_v21  ;;  %v1334_v24 = vpop.f32.mrb[9].mxu1 }
 0x223   : > { %v1070_v20 = vpop.f32.mrb[10].mxu0 }
 0x224   : > { %v1359_v32 = vadd.f32 %v1355_v3, %v1351_v15  ;;  %v1085_v12 = vadd.f32 %v1070_v20, %v808_v35  ;;  %v1072_v19 = vpop.f32.mrb[11].mxu0 }
 0x225   : > { %v1337_v44 = vpop.f32.mrb[10].mxu1 }
 0x226   : > { %1364 = vst.msk [vmem:[%s2440_s27] sm:$0xff] %vm268_vm0, %v1359_v32  ;;  %v1352_v37 = vadd.f32 %v1337_v44, %v1085_v12  ;;  %v1339_v7 = vpop.f32.mrb[11].mxu1 }
 0x227   : > { %v1075_v11 = vpop.f32.mrb[12].mxu0 }
 0x228   : > { %v1360_v46 = vadd.f32 %v1356_v33, %v1352_v37  ;;  %v1086_v59 = vadd.f32 %v1075_v11, %v813_v22  ;;  %v1077_v40 = vpop.f32.mrb[13].mxu0 }
 0x229   : > { %v1342_v30 = vpop.f32.mrb[12].mxu1 }
 0x22a   : > { %1365 = vst.msk [vmem:[%s2440_s27 + $0x8] sm:$0xff] %vm268_vm0, %v1360_v46  ;;  %v1353_v63 = vadd.f32 %v1342_v30, %v1086_v59  ;;  %v1344_v54 = vpop.f32.mrb[13].mxu1 }
 0x22b   : > { %v1080_v51 = vpop.f32.mrb[14].mxu0 }
 0x22c   : > { %v1361_v14 = vadd.f32 %v1357_v61, %v1353_v63  ;;  %v1087_v1 = vadd.f32 %v1080_v51, %v818_v10  ;;  %v1082_v17 = vpop.f32.mrb[15].mxu0 }
 0x22d   : > { %v1347_v5 = vpop.f32.mrb[14].mxu1 }
 0x22e   : > { %1366 = vst.msk [vmem:[%s2440_s27 + $0x10] sm:$0xff] %vm268_vm0, %v1361_v14  ;;  %v1354_v48 = vadd.f32 %v1347_v5, %v1087_v1  ;;  %v1349_v23 = vpop.f32.mrb[15].mxu1 }
 0x230   : > { %v1362_v4 = vadd.f32 %v1358_v31, %v1354_v48 }
 0x232   : > { %1367 = vst.msk [vmem:[%s2440_s27 + $0x18] sm:$0xff] %vm268_vm0, %v1362_v4 }
 0x233   : > { %1776 = shalt.err (!%p1773_p5)
}
 0x234   : > { %s1777_s10 = scalar_lea.hbm %s2465_s5, 512  ;;  %s1781_s19 = scalar_lea.hbm %s2522_s3, 1024 }
 0x235   : > { %p1778_p6 = scmp.ne.s32.totalorder %s2465_s5, %s1777_s10  ;;  %p1782_p10 = scmp.lt.u32.totalorder %s2465_s5, %s2522_s3 }
 0x236   : > { %p1783_p11 = scmp.lt.u32.totalorder %s1781_s19, %s1777_s10  ;;  %p1785_p13 = scmp.lt.u32.totalorder %s1777_s10, %s2465_s5 }
 0x237   : > { %p1779_p7 = pnand %p1778_p6, %p1908_p4 }
 0x238   : > { %p1784_p12 = por %p1783_p11, %p1782_p10 }
 0x239   : > { %p1780_p9 = pneg %p1779_p7 }
 0x23a   : > { %p1786_p0 = por %p1785_p13, %p1784_p12 }
 0x23c   : > { %p1787_p1 = pnand %p1786_p0, %p1780_p9 }
 0x23e   : > { %1790 = shalt.err (!%p1787_p1)
}
 0x23f   : > { %s1846_s26 = smov 128   ;;  %s1847_s27 = smov 8  }
 0x240   : > { %1542 = dma.vmem_to_hbm [thread:$0]  (%p1908_p4), %s2467_s29, 512, %s2465_s5, %s2473_s15, %s1846_s26, %s1846_s26, %s1847_s27  }
 0x241 PF: > { %p1548_p2 = scmp.ge.s32.totalorder %s1841_s17, 2  ;;  %s1399_s28 = sand.u32 1, %s1821_s12  }
 0x242   : > { %s1400_s30 = scalar_lea.sflag [#allocation3], %s1399_s28 }
 0x243   : > { %p1545_p3 = pnand %p1548_p2, %p1915_p8 }
 0x245   : > { %1816 = dma.done.wait (!%p1545_p3), %s1400_s30, 512  }
 0x246   : > { %1818 = vsyncadd (!%p1545_p3), %s1400_s30, 4294966784  ;;  %s16_s17 = sadd.s32 1, %s1841_s17   ;;  %s2532_s12 = smov %s1825_s13 }
 0x247   : > { %p13_p5 = scmp.ge.s32.totalorder %s16_s17, 4   ;;  %s2533_s13 = smov %s1829_s14 }
 0x248   : > { %s2534_s14 = smov %s1921_s25  ;;  %s2535_s15 = smov %s1837_s16 }
 0x249   : > { %s2536_s16 = smov %s2538_s20  ;;  %15 = sbr.rel (!%p13_p5) target bundleno = 4 (0x4), region = 80 }
 0x250   :  { %1405 = vsyncpa [#allocation3], 1 }
 0x251   :  { %1407 = vsyncpa [#allocation3 + $0x1], 1 }

</bundles_post_ra>
